<compile_context>
chip_gen: v7x
topology: tpu7x:2x2x1
jax: 0.10.0
libtpu: 0.0.40
codegen_flags: <defaults>
</compile_context>

<pallas_src>
import functools

import jax
import jax.numpy as jnp
from jax.experimental import pallas as pl
from jax.experimental.pallas import tpu as pltpu

EPS = 1e-5  # nn.LayerNorm default


def gru_kernel(
    pre_ref,     # (T*B, 2*Cpad)  precomputed input-side gate pre-activations (+ hidden biases for sites>0)
    w_h_ref,     # (Cpad, 2*Cpad) fused [w_ih | w_uh], transposed, padded, bf16
    vec_ref,     # (8, Cpad)      row 0 = LayerNorm gamma, row 1 = beta (zero-padded)
    out_ref,     # (T*B, Cpad)    per-site hidden output (channel-padded)
    h_scratch,   # VMEM (B, Cpad) hidden state carried across grid steps
    *,
    cout,        # true number of output channels
    cpad,        # padded channel count (multiple of 128)
    batch,       # B
    gsites,      # sites per load/store slab (8 // B when B divides 8)
):
    @pl.when(pl.program_id(0) == 0)
    def _init():
        h_scratch[...] = jnp.zeros_like(h_scratch)

    # Invariant operands, hoisted out of the site loop.
    w_h = w_h_ref[...]                  # (Cpad, 2*Cpad) bf16
    gamma = vec_ref[0:1, :]             # (1, Cpad)
    beta = vec_ref[1:2, :]              # (1, Cpad)
    inv_c = 1.0 / cout
    slab = gsites * batch               # rows per aligned load/store slab
    n_groups = pre_ref.shape[0] // slab

    def site_update(h_prev, pre):
        # `pre` already contains the input projection and all biases; at site 0
        # h_prev == 0 and pre excludes the hidden biases, matching the PyTorch
        # first_GRU_step exactly.  bf16 MXU inputs, f32 accumulation.
        z = pre + jnp.dot(h_prev.astype(w_h.dtype), w_h,
                          preferred_element_type=jnp.float32)     # (B, 2*Cpad)
        input_gate = jnp.tanh(z[:, :cpad])
        update_gate = jax.nn.sigmoid(z[:, cpad:])
        h_new = h_prev + update_gate * (input_gate - h_prev)      # (B, Cpad)
        # LayerNorm over the true cout channels. Padded lanes of h_new are
        # exactly 0, so the unmasked sums are exact; mean and E[h^2] are
        # independent XLU reductions (no serial mean->var chain).
        mean = jnp.sum(h_new, axis=-1, keepdims=True) * inv_c
        msq = jnp.sum(h_new * h_new, axis=-1, keepdims=True) * inv_c
        var = msq - mean * mean
        return (h_new - mean) * jax.lax.rsqrt(var + EPS) * gamma + beta

    def group_step(g, h):
        off = pl.multiple_of(g * slab, slab)
        pre_slab = pre_ref[pl.ds(off, slab), :]        # one aligned (slab, 2*Cpad) load
        outs = []
        for j in range(gsites):                        # serial recurrence within the slab
            h = site_update(h, pre_slab[j * batch:(j + 1) * batch, :])
            outs.append(h)
        # One full, sublane-dense store per group (off the recurrence dep chain).
        out_ref[pl.ds(off, slab), :] = jnp.concatenate(outs, axis=0).astype(out_ref.dtype)
        return h

    h_last = jax.lax.fori_loop(0, n_groups, group_step, h_scratch[...],
                               unroll=True if n_groups <= 8 else 4)
    h_scratch[...] = h_last


def gru_forward(x, params):
    """x: [B, Cin, S] (PyTorch layout). Returns [B, Cout, S]."""
    B, Cin, S = x.shape
    Cout = params["w_ii"].shape[0]
    Cpad = ((Cout + 127) // 128) * 128       # lane-dense / MXU-friendly channel pad

    def pad_cols(w):   # (X, Cout) -> (X, Cpad), zero-padded
        return jnp.pad(w, ((0, 0), (0, Cpad - Cout)))

    def pad_vec(v):    # (Cout,) -> (Cpad,)
        return jnp.pad(v, (0, Cpad - Cout))

    # Fused + padded parameters (nn.Linear stores (out, in); transpose for x @ W).
    w_in = jnp.concatenate([pad_cols(params["w_ii"].T), pad_cols(params["w_ui"].T)], axis=1)  # (Cin, 2*Cpad)
    b_in = jnp.concatenate([pad_vec(params["b_ii"]), pad_vec(params["b_ui"])])                # (2*Cpad,)
    b_h = jnp.concatenate([pad_vec(params["b_ih"]), pad_vec(params["b_uh"])])                 # (2*Cpad,)

    # Fused hidden-side weight, stored bf16 (MXU inputs); accumulation stays f32.
    w_h = jnp.concatenate([pad_cols(params["w_ih"].T), pad_cols(params["w_uh"].T)], axis=1)   # (Cout, 2*Cpad)
    w_h = jnp.pad(w_h, ((0, Cpad - Cout), (0, 0))).astype(jnp.bfloat16)                       # (Cpad, 2*Cpad)

    # LayerNorm affine packed into one 8-sublane ref (row 0 = gamma, row 1 = beta).
    vec = (jnp.zeros((8, Cpad), jnp.float32)
           .at[0].set(pad_vec(params["ln_w"]))
           .at[1].set(pad_vec(params["ln_b"])))

    # Hoisted input projection: ONE well-shaped f32 matmul over all S*B rows.
    # Hidden biases are folded in for every site except the first (the PyTorch
    # first step has no hidden-side term, and h_prev == 0 there).
    x_sb = jnp.transpose(x, (2, 0, 1)).astype(jnp.float32)                    # (S, B, Cin)
    pre = jnp.dot(x_sb.reshape(S * B, Cin), w_in,
                  precision=jax.lax.Precision.HIGHEST) + (b_in + b_h)         # (S*B, 2*Cpad)
    pre = pre.reshape(S, B, 2 * Cpad).at[0].add(-b_h)

    # Site grouping: gsites per slab so each VMEM load/store is a full, aligned
    # 8-sublane slab (B=2 -> 4 sites per slab).
    G = 8 // B if (B <= 8 and 8 % B == 0) else 1
    # TODO(synk): for B that neither divides 8 nor is a multiple of 8, pad the
    # batch dim to 8 to keep the per-site slices sublane-aligned.

    # Sites per grid step. Chunk-to-chunk pipelining buys nothing on a serial
    # recurrence, so keep the grid as small as the VMEM budget allows.
    T = S if S <= 512 else 512
    T = ((T + G - 1) // G) * G
    S_pad = ((S + T - 1) // T) * T
    if S_pad != S:
        pre = jnp.pad(pre, ((0, S_pad - S), (0, 0), (0, 0)))   # padded sites are discarded
    pre = pre.reshape(S_pad * B, 2 * Cpad)                     # sublane-dense 2-D layout
    grid = (S_pad // T,)

    kernel = functools.partial(gru_kernel, cout=Cout, cpad=Cpad, batch=B, gsites=G)

    pre_bytes = S_pad * B * 2 * Cpad * 4
    out_bytes = S_pad * B * Cpad * 4
    wh_bytes = Cpad * 2 * Cpad * 2

    out = pl.pallas_call(
        kernel,
        out_shape=jax.ShapeDtypeStruct((S_pad * B, Cpad), jnp.float32),
        grid_spec=pltpu.PrefetchScalarGridSpec(
            num_scalar_prefetch=0,
            grid=grid,
            in_specs=[
                pl.BlockSpec((T * B, 2 * Cpad), lambda c: (c, 0)),   # input-side pre-activations
                pl.BlockSpec((Cpad, 2 * Cpad), lambda c: (0, 0)),    # fused hidden weight (bf16)
                pl.BlockSpec((8, Cpad), lambda c: (0, 0)),           # LayerNorm gamma/beta
            ],
            out_specs=pl.BlockSpec((T * B, Cpad), lambda c: (c, 0)),
            scratch_shapes=[pltpu.VMEM((B, Cpad), jnp.float32)],     # hidden-state carry
        ),
        compiler_params=pltpu.CompilerParams(
            dimension_semantics=("arbitrary",),       # true recurrence over site chunks
            vmem_limit_bytes=32 * 1024 * 1024,        # <= scoped default on all generations
        ),
        cost_estimate=pl.CostEstimate(
            flops=2 * S_pad * B * Cpad * 2 * Cpad,
            transcendentals=S_pad * B * (2 * Cpad + 1),
            bytes_accessed=pre_bytes + out_bytes + wh_bytes + vec.size * 4,
        ),
        # TODO(synk): on v7x (2 TensorCores) add a leading "parallel" batch-chunk
        # grid axis with a per-chunk h_scratch slice once B is large enough;
        # TODO(synk): hold w_h resident in the MXU via matmul_push_rhs/acc_lhs/pop
        # to avoid re-streaming the weight every serial step.
    )(pre, w_h, vec)

    out = out.reshape(S_pad, B, Cpad)[:S, :, :Cout]              # drop site / channel padding
    return jnp.transpose(out, (1, 2, 0)).astype(x.dtype)         # back to [B, Cout, S]


def init_params(key, in_channels, out_channels):
    """Deterministic synthetic parameters matching the nn.Module shapes."""
    ks = jax.random.split(key, 8)
    scale_i = 1.0 / jnp.sqrt(in_channels)
    scale_h = 1.0 / jnp.sqrt(out_channels)
    return {
        "w_ii": jax.random.uniform(ks[0], (out_channels, in_channels), jnp.float32, -scale_i, scale_i),
        "b_ii": jax.random.uniform(ks[1], (out_channels,), jnp.float32, -scale_i, scale_i),
        "w_ih": jax.random.uniform(ks[2], (out_channels, out_channels), jnp.float32, -scale_h, scale_h),
        "b_ih": jax.random.uniform(ks[3], (out_channels,), jnp.float32, -scale_h, scale_h),
        "w_ui": jax.random.uniform(ks[4], (out_channels, in_channels), jnp.float32, -scale_i, scale_i),
        "b_ui": jax.random.uniform(ks[5], (out_channels,), jnp.float32, -scale_i, scale_i),
        "w_uh": jax.random.uniform(ks[6], (out_channels, out_channels), jnp.float32, -scale_h, scale_h),
        "b_uh": jax.random.uniform(ks[7], (out_channels,), jnp.float32, -scale_h, scale_h),
        "ln_w": jnp.ones((out_channels,), jnp.float32),
        "ln_b": jnp.zeros((out_channels,), jnp.float32),
    }


def gru_reference(x, params, hidden_matmul_dtype=jnp.float32):
    """Pure-JAX reference mirroring the PyTorch forward.

    `hidden_matmul_dtype=jnp.bfloat16` reproduces the kernel's matmul input
    precision (bf16 operands, f32 accumulation) on the hidden-side linears only.
    """
    B, Cin, S = x.shape
    ln_w, ln_b = params["ln_w"], params["ln_b"]

    def lin(v, w, b, dt=jnp.float32):
        return jnp.dot(v.astype(dt), w.T.astype(dt),
                       preferred_element_type=jnp.float32,
                       precision=jax.lax.Precision.HIGHEST) + b

    def layer_norm(h):
        mean = jnp.mean(h, axis=-1, keepdims=True)
        var = jnp.mean((h - mean) ** 2, axis=-1, keepdims=True)
        return (h - mean) / jnp.sqrt(var + EPS) * ln_w + ln_b

    outs = []
    hidden = None
    for site in range(S):
        inp = x[:, :, site]
        xi = lin(inp, params["w_ii"], params["b_ii"])
        xu = lin(inp, params["w_ui"], params["b_ui"])
        if site == 0:
            ig = jnp.tanh(xi)
            ug = jax.nn.sigmoid(xu)
            hidden = layer_norm(ig * ug)
        else:
            ig = jnp.tanh(xi + lin(hidden, params["w_ih"], params["b_ih"], hidden_matmul_dtype))
            ug = jax.nn.sigmoid(xu + lin(hidden, params["w_uh"], params["b_uh"], hidden_matmul_dtype))
            hidden = layer_norm(hidden * (1.0 - ug) + ig * ug)
        outs.append(hidden[:, :, None])
    return jnp.concatenate(outs, axis=2)


if __name__ == "__main__":
    B, Cin, Cout, S = 2, 4, 32, 8  # batch, in_channels, out_channels, num_sites

    key = jax.random.PRNGKey(0)
    k_x, k_p = jax.random.split(key)
    x = jax.random.normal(k_x, (B, Cin, S), jnp.float32)
    params = init_params(k_p, Cin, Cout)

    out = jax.block_until_ready(gru_forward(x, params))
    assert out.shape == (B, Cout, S), out.shape

    # Primary check: reference with the same bf16-input / f32-accumulate
    # hidden-side matmul precision as the kernel.
    ref_bf16 = jax.block_until_ready(
        gru_reference(x, params, hidden_matmul_dtype=jnp.bfloat16))
    assert jnp.allclose(out, ref_bf16, atol=5e-3, rtol=5e-3), \
        "mismatch vs bf16-matmul reference"

    # Secondary check: full-f32 reference; only the hidden matmul input
    # precision differs, so allow a looser tolerance.
    ref_f32 = jax.block_until_ready(gru_reference(x, params))
    assert jnp.allclose(out, ref_f32, atol=5e-2, rtol=5e-2), \
        "mismatch vs f32 reference"

    print("KERNEL_OK")
</pallas_src>

<mosaic_0001>
module attributes {stable_mosaic.version = 11 : i64} {
  func.func @gru_kernel(%arg0: i32, %arg1: memref<16x256xf32, #tpu.memory_space<vmem>>, %arg2: memref<128x256xbf16, #tpu.memory_space<vmem>>, %arg3: memref<8x128xf32, #tpu.memory_space<vmem>>, %arg4: memref<16x128xf32, #tpu.memory_space<vmem>>, %arg5: memref<2x128xf32, #tpu.memory_space<vmem>>) attributes {dimension_semantics = [#tpu.dimension_semantics<arbitrary>], iteration_bounds = array<i64: 1>, scalar_prefetch = 0 : i64, scratch_operands = 1 : i64, tpu.core_type = #tpu.core_type<tc>, window_params = [{transform_indices = @transform_0, window_bounds = array<i64: 16, 256>}, {pipeline_mode = #tpu.pipeline_mode<synchronous>, transform_indices = @transform_1, window_bounds = array<i64: 128, 256>}, {pipeline_mode = #tpu.pipeline_mode<synchronous>, transform_indices = @transform_2, window_bounds = array<i64: 8, 128>}, {transform_indices = @transform_3, window_bounds = array<i64: 16, 128>}]} {
    %c0_i32 = arith.constant 0 : i32
    %0 = arith.cmpi eq, %arg0, %c0_i32 : i32
    %1 = arith.extui %0 : i1 to i32
    %c0_i32_0 = arith.constant 0 : i32
    %2 = arith.cmpi ne, %1, %c0_i32_0 : i32
    scf.if %2 {
      %cst_70 = arith.constant 0.000000e+00 : f32
      %318 = vector.broadcast %cst_70 : f32 to vector<2x128xf32>
      %c0_71 = arith.constant 0 : index
      %c0_72 = arith.constant 0 : index
      %319 = vector.load %arg5[%c0_71, %c0_72] : memref<2x128xf32, #tpu.memory_space<vmem>>, vector<2x128xf32>
      tpu.vector_store %arg5[%c0_71, %c0_72], %318 {strides = array<i32>} : memref<2x128xf32, #tpu.memory_space<vmem>>, vector<2x128xf32>,
    } else {
    }
    %c0 = arith.constant 0 : index
    %c0_1 = arith.constant 0 : index
    %3 = vector.load %arg2[%c0, %c0_1] : memref<128x256xbf16, #tpu.memory_space<vmem>>, vector<128x256xbf16>
    %c0_2 = arith.constant 0 : index
    %c0_3 = arith.constant 0 : index
    %4 = vector.load %arg3[%c0_2, %c0_3] : memref<8x128xf32, #tpu.memory_space<vmem>>, vector<1x128xf32>
    %c1 = arith.constant 1 : index
    %c0_4 = arith.constant 0 : index
    %5 = vector.load %arg3[%c1, %c0_4] : memref<8x128xf32, #tpu.memory_space<vmem>>, vector<1x128xf32>
    %c0_5 = arith.constant 0 : index
    %c0_6 = arith.constant 0 : index
    %6 = vector.load %arg5[%c0_5, %c0_6] : memref<2x128xf32, #tpu.memory_space<vmem>>, vector<2x128xf32>
    %c0_i32_7 = arith.constant 0 : i32
    %c8_i32 = arith.constant 8 : i32
    %7 = arith.muli %c0_i32_7, %c8_i32 : i32
    %8 = tpu.assume_multiple %7, 8 : i32
    %9 = arith.index_cast %8 : i32 to index
    %c0_8 = arith.constant 0 : index
    %10 = vector.load %arg1[%9, %c0_8] : memref<16x256xf32, #tpu.memory_space<vmem>>, vector<8x256xf32>
    %11 = vector.extract_strided_slice %10 {offsets = [0, 0], sizes = [2, 256], strides = [1, 1]} : vector<8x256xf32> to vector<2x256xf32>
    %12 = arith.truncf %6 : vector<2x128xf32> to vector<2x128xbf16>
    %cst = arith.constant dense<0.000000e+00> : vector<2x256xf32>
    %13 = tpu.matmul %12, %3, %cst {dimension_numbers = #tpu.dot_dimension_numbers<[1], [0], [0], [1], [0, 0, 1, 1], [], []>} : vector<2x128xbf16>, vector<128x256xbf16>, vector<2x256xf32> -> vector<2x256xf32>
    %14 = arith.addf %11, %13 : vector<2x256xf32>
    %15 = vector.extract_strided_slice %14 {offsets = [0, 0], sizes = [2, 128], strides = [1, 1]} : vector<2x256xf32> to vector<2x128xf32>
    %16 = math.tanh %15 : vector<2x128xf32>
    %17 = vector.extract_strided_slice %14 {offsets = [0, 128], sizes = [2, 128], strides = [1, 1]} : vector<2x256xf32> to vector<2x128xf32>
    %18 = arith.negf %17 : vector<2x128xf32>
    %19 = math.exp %18 : vector<2x128xf32>
    %cst_9 = arith.constant 1.000000e+00 : f32
    %20 = vector.broadcast %cst_9 : f32 to vector<2x128xf32>
    %21 = arith.addf %20, %19 : vector<2x128xf32>
    %22 = arith.divf %20, %21 : vector<2x128xf32>
    %23 = arith.subf %16, %6 : vector<2x128xf32>
    %24 = arith.mulf %22, %23 : vector<2x128xf32>
    %25 = arith.addf %6, %24 : vector<2x128xf32>
    %cst_10 = arith.constant dense<0.000000e+00> : vector<2xf32>
    %26 = vector.multi_reduction <add>, %25, %cst_10 [1] : vector<2x128xf32> to vector<2xf32>
    %27 = vector.shape_cast %26 : vector<2xf32> to vector<2x1xf32>
    %cst_11 = arith.constant 3.125000e-02 : f32
    %28 = vector.broadcast %cst_11 : f32 to vector<2x1xf32>
    %29 = arith.mulf %27, %28 : vector<2x1xf32>
    %30 = arith.mulf %25, %25 : vector<2x128xf32>
    %cst_12 = arith.constant dense<0.000000e+00> : vector<2xf32>
    %31 = vector.multi_reduction <add>, %30, %cst_12 [1] : vector<2x128xf32> to vector<2xf32>
    %32 = vector.shape_cast %31 : vector<2xf32> to vector<2x1xf32>
    %cst_13 = arith.constant 3.125000e-02 : f32
    %33 = vector.broadcast %cst_13 : f32 to vector<2x1xf32>
    %34 = arith.mulf %32, %33 : vector<2x1xf32>
    %35 = arith.mulf %29, %29 : vector<2x1xf32>
    %36 = arith.subf %34, %35 : vector<2x1xf32>
    %37 = vector.broadcast %29 : vector<2x1xf32> to vector<2x128xf32>
    %38 = arith.subf %25, %37 : vector<2x128xf32>
    %cst_14 = arith.constant 9.99999974E-6 : f32
    %39 = vector.broadcast %cst_14 : f32 to vector<2x1xf32>
    %40 = arith.addf %36, %39 : vector<2x1xf32>
    %41 = math.rsqrt %40 : vector<2x1xf32>
    %42 = vector.broadcast %41 : vector<2x1xf32> to vector<2x128xf32>
    %43 = arith.mulf %38, %42 : vector<2x128xf32>
    %44 = vector.broadcast %4 : vector<1x128xf32> to vector<2x128xf32>
    %45 = arith.mulf %43, %44 : vector<2x128xf32>
    %46 = vector.broadcast %5 : vector<1x128xf32> to vector<2x128xf32>
    %47 = arith.addf %45, %46 : vector<2x128xf32>
    %48 = vector.extract_strided_slice %10 {offsets = [2, 0], sizes = [2, 256], strides = [1, 1]} : vector<8x256xf32> to vector<2x256xf32>
    %49 = arith.truncf %47 : vector<2x128xf32> to vector<2x128xbf16>
    %cst_15 = arith.constant dense<0.000000e+00> : vector<2x256xf32>
    %50 = tpu.matmul %49, %3, %cst_15 {dimension_numbers = #tpu.dot_dimension_numbers<[1], [0], [0], [1], [0, 0, 1, 1], [], []>} : vector<2x128xbf16>, vector<128x256xbf16>, vector<2x256xf32> -> vector<2x256xf32>
    %51 = arith.addf %48, %50 : vector<2x256xf32>
    %52 = vector.extract_strided_slice %51 {offsets = [0, 0], sizes = [2, 128], strides = [1, 1]} : vector<2x256xf32> to vector<2x128xf32>
    %53 = math.tanh %52 : vector<2x128xf32>
    %54 = vector.extract_strided_slice %51 {offsets = [0, 128], sizes = [2, 128], strides = [1, 1]} : vector<2x256xf32> to vector<2x128xf32>
    %55 = arith.negf %54 : vector<2x128xf32>
    %56 = math.exp %55 : vector<2x128xf32>
    %cst_16 = arith.constant 1.000000e+00 : f32
    %57 = vector.broadcast %cst_16 : f32 to vector<2x128xf32>
    %58 = arith.addf %57, %56 : vector<2x128xf32>
    %59 = arith.divf %57, %58 : vector<2x128xf32>
    %60 = arith.subf %53, %47 : vector<2x128xf32>
    %61 = arith.mulf %59, %60 : vector<2x128xf32>
    %62 = arith.addf %47, %61 : vector<2x128xf32>
    %cst_17 = arith.constant dense<0.000000e+00> : vector<2xf32>
    %63 = vector.multi_reduction <add>, %62, %cst_17 [1] : vector<2x128xf32> to vector<2xf32>
    %64 = vector.shape_cast %63 : vector<2xf32> to vector<2x1xf32>
    %cst_18 = arith.constant 3.125000e-02 : f32
    %65 = vector.broadcast %cst_18 : f32 to vector<2x1xf32>
    %66 = arith.mulf %64, %65 : vector<2x1xf32>
    %67 = arith.mulf %62, %62 : vector<2x128xf32>
    %cst_19 = arith.constant dense<0.000000e+00> : vector<2xf32>
    %68 = vector.multi_reduction <add>, %67, %cst_19 [1] : vector<2x128xf32> to vector<2xf32>
    %69 = vector.shape_cast %68 : vector<2xf32> to vector<2x1xf32>
    %cst_20 = arith.constant 3.125000e-02 : f32
    %70 = vector.broadcast %cst_20 : f32 to vector<2x1xf32>
    %71 = arith.mulf %69, %70 : vector<2x1xf32>
    %72 = arith.mulf %66, %66 : vector<2x1xf32>
    %73 = arith.subf %71, %72 : vector<2x1xf32>
    %74 = vector.broadcast %66 : vector<2x1xf32> to vector<2x128xf32>
    %75 = arith.subf %62, %74 : vector<2x128xf32>
    %cst_21 = arith.constant 9.99999974E-6 : f32
    %76 = vector.broadcast %cst_21 : f32 to vector<2x1xf32>
    %77 = arith.addf %73, %76 : vector<2x1xf32>
    %78 = math.rsqrt %77 : vector<2x1xf32>
    %79 = vector.broadcast %78 : vector<2x1xf32> to vector<2x128xf32>
    %80 = arith.mulf %75, %79 : vector<2x128xf32>
    %81 = vector.broadcast %4 : vector<1x128xf32> to vector<2x128xf32>
    %82 = arith.mulf %80, %81 : vector<2x128xf32>
    %83 = vector.broadcast %5 : vector<1x128xf32> to vector<2x128xf32>
    %84 = arith.addf %82, %83 : vector<2x128xf32>
    %85 = vector.extract_strided_slice %10 {offsets = [4, 0], sizes = [2, 256], strides = [1, 1]} : vector<8x256xf32> to vector<2x256xf32>
    %86 = arith.truncf %84 : vector<2x128xf32> to vector<2x128xbf16>
    %cst_22 = arith.constant dense<0.000000e+00> : vector<2x256xf32>
    %87 = tpu.matmul %86, %3, %cst_22 {dimension_numbers = #tpu.dot_dimension_numbers<[1], [0], [0], [1], [0, 0, 1, 1], [], []>} : vector<2x128xbf16>, vector<128x256xbf16>, vector<2x256xf32> -> vector<2x256xf32>
    %88 = arith.addf %85, %87 : vector<2x256xf32>
    %89 = vector.extract_strided_slice %88 {offsets = [0, 0], sizes = [2, 128], strides = [1, 1]} : vector<2x256xf32> to vector<2x128xf32>
    %90 = math.tanh %89 : vector<2x128xf32>
    %91 = vector.extract_strided_slice %88 {offsets = [0, 128], sizes = [2, 128], strides = [1, 1]} : vector<2x256xf32> to vector<2x128xf32>
    %92 = arith.negf %91 : vector<2x128xf32>
    %93 = math.exp %92 : vector<2x128xf32>
    %cst_23 = arith.constant 1.000000e+00 : f32
    %94 = vector.broadcast %cst_23 : f32 to vector<2x128xf32>
    %95 = arith.addf %94, %93 : vector<2x128xf32>
    %96 = arith.divf %94, %95 : vector<2x128xf32>
    %97 = arith.subf %90, %84 : vector<2x128xf32>
    %98 = arith.mulf %96, %97 : vector<2x128xf32>
    %99 = arith.addf %84, %98 : vector<2x128xf32>
    %cst_24 = arith.constant dense<0.000000e+00> : vector<2xf32>
    %100 = vector.multi_reduction <add>, %99, %cst_24 [1] : vector<2x128xf32> to vector<2xf32>
    %101 = vector.shape_cast %100 : vector<2xf32> to vector<2x1xf32>
    %cst_25 = arith.constant 3.125000e-02 : f32
    %102 = vector.broadcast %cst_25 : f32 to vector<2x1xf32>
    %103 = arith.mulf %101, %102 : vector<2x1xf32>
    %104 = arith.mulf %99, %99 : vector<2x128xf32>
    %cst_26 = arith.constant dense<0.000000e+00> : vector<2xf32>
    %105 = vector.multi_reduction <add>, %104, %cst_26 [1] : vector<2x128xf32> to vector<2xf32>
    %106 = vector.shape_cast %105 : vector<2xf32> to vector<2x1xf32>
    %cst_27 = arith.constant 3.125000e-02 : f32
    %107 = vector.broadcast %cst_27 : f32 to vector<2x1xf32>
    %108 = arith.mulf %106, %107 : vector<2x1xf32>
    %109 = arith.mulf %103, %103 : vector<2x1xf32>
    %110 = arith.subf %108, %109 : vector<2x1xf32>
    %111 = vector.broadcast %103 : vector<2x1xf32> to vector<2x128xf32>
    %112 = arith.subf %99, %111 : vector<2x128xf32>
    %cst_28 = arith.constant 9.99999974E-6 : f32
    %113 = vector.broadcast %cst_28 : f32 to vector<2x1xf32>
    %114 = arith.addf %110, %113 : vector<2x1xf32>
    %115 = math.rsqrt %114 : vector<2x1xf32>
    %116 = vector.broadcast %115 : vector<2x1xf32> to vector<2x128xf32>
    %117 = arith.mulf %112, %116 : vector<2x128xf32>
    %118 = vector.broadcast %4 : vector<1x128xf32> to vector<2x128xf32>
    %119 = arith.mulf %117, %118 : vector<2x128xf32>
    %120 = vector.broadcast %5 : vector<1x128xf32> to vector<2x128xf32>
    %121 = arith.addf %119, %120 : vector<2x128xf32>
    %122 = vector.extract_strided_slice %10 {offsets = [6, 0], sizes = [2, 256], strides = [1, 1]} : vector<8x256xf32> to vector<2x256xf32>
    %123 = arith.truncf %121 : vector<2x128xf32> to vector<2x128xbf16>
    %cst_29 = arith.constant dense<0.000000e+00> : vector<2x256xf32>
    %124 = tpu.matmul %123, %3, %cst_29 {dimension_numbers = #tpu.dot_dimension_numbers<[1], [0], [0], [1], [0, 0, 1, 1], [], []>} : vector<2x128xbf16>, vector<128x256xbf16>, vector<2x256xf32> -> vector<2x256xf32>
    %125 = arith.addf %122, %124 : vector<2x256xf32>
    %126 = vector.extract_strided_slice %125 {offsets = [0, 0], sizes = [2, 128], strides = [1, 1]} : vector<2x256xf32> to vector<2x128xf32>
    %127 = math.tanh %126 : vector<2x128xf32>
    %128 = vector.extract_strided_slice %125 {offsets = [0, 128], sizes = [2, 128], strides = [1, 1]} : vector<2x256xf32> to vector<2x128xf32>
    %129 = arith.negf %128 : vector<2x128xf32>
    %130 = math.exp %129 : vector<2x128xf32>
    %cst_30 = arith.constant 1.000000e+00 : f32
    %131 = vector.broadcast %cst_30 : f32 to vector<2x128xf32>
    %132 = arith.addf %131, %130 : vector<2x128xf32>
    %133 = arith.divf %131, %132 : vector<2x128xf32>
    %134 = arith.subf %127, %121 : vector<2x128xf32>
    %135 = arith.mulf %133, %134 : vector<2x128xf32>
    %136 = arith.addf %121, %135 : vector<2x128xf32>
    %cst_31 = arith.constant dense<0.000000e+00> : vector<2xf32>
    %137 = vector.multi_reduction <add>, %136, %cst_31 [1] : vector<2x128xf32> to vector<2xf32>
    %138 = vector.shape_cast %137 : vector<2xf32> to vector<2x1xf32>
    %cst_32 = arith.constant 3.125000e-02 : f32
    %139 = vector.broadcast %cst_32 : f32 to vector<2x1xf32>
    %140 = arith.mulf %138, %139 : vector<2x1xf32>
    %141 = arith.mulf %136, %136 : vector<2x128xf32>
    %cst_33 = arith.constant dense<0.000000e+00> : vector<2xf32>
    %142 = vector.multi_reduction <add>, %141, %cst_33 [1] : vector<2x128xf32> to vector<2xf32>
    %143 = vector.shape_cast %142 : vector<2xf32> to vector<2x1xf32>
    %cst_34 = arith.constant 3.125000e-02 : f32
    %144 = vector.broadcast %cst_34 : f32 to vector<2x1xf32>
    %145 = arith.mulf %143, %144 : vector<2x1xf32>
    %146 = arith.mulf %140, %140 : vector<2x1xf32>
    %147 = arith.subf %145, %146 : vector<2x1xf32>
    %148 = vector.broadcast %140 : vector<2x1xf32> to vector<2x128xf32>
    %149 = arith.subf %136, %148 : vector<2x128xf32>
    %cst_35 = arith.constant 9.99999974E-6 : f32
    %150 = vector.broadcast %cst_35 : f32 to vector<2x1xf32>
    %151 = arith.addf %147, %150 : vector<2x1xf32>
    %152 = math.rsqrt %151 : vector<2x1xf32>
    %153 = vector.broadcast %152 : vector<2x1xf32> to vector<2x128xf32>
    %154 = arith.mulf %149, %153 : vector<2x128xf32>
    %155 = vector.broadcast %4 : vector<1x128xf32> to vector<2x128xf32>
    %156 = arith.mulf %154, %155 : vector<2x128xf32>
    %157 = vector.broadcast %5 : vector<1x128xf32> to vector<2x128xf32>
    %158 = arith.addf %156, %157 : vector<2x128xf32>
    %159 = tpu.concatenate %47, %84, %121, %158 in 0 : vector<2x128xf32>, vector<2x128xf32>, vector<2x128xf32>, vector<2x128xf32> -> vector<8x128xf32>
    %160 = arith.index_cast %8 : i32 to index
    %c0_36 = arith.constant 0 : index
    %161 = vector.load %arg4[%160, %c0_36] : memref<16x128xf32, #tpu.memory_space<vmem>>, vector<8x128xf32>
    tpu.vector_store %arg4[%160, %c0_36], %159 {strides = array<i32>} : memref<16x128xf32, #tpu.memory_space<vmem>>, vector<8x128xf32>,
    %c1_i32 = arith.constant 1 : i32
    %c8_i32_37 = arith.constant 8 : i32
    %162 = arith.muli %c1_i32, %c8_i32_37 : i32
    %163 = tpu.assume_multiple %162, 8 : i32
    %164 = arith.index_cast %163 : i32 to index
    %c0_38 = arith.constant 0 : index
    %165 = vector.load %arg1[%164, %c0_38] : memref<16x256xf32, #tpu.memory_space<vmem>>, vector<8x256xf32>
    %166 = vector.extract_strided_slice %165 {offsets = [0, 0], sizes = [2, 256], strides = [1, 1]} : vector<8x256xf32> to vector<2x256xf32>
    %167 = arith.truncf %158 : vector<2x128xf32> to vector<2x128xbf16>
    %cst_39 = arith.constant dense<0.000000e+00> : vector<2x256xf32>
    %168 = tpu.matmul %167, %3, %cst_39 {dimension_numbers = #tpu.dot_dimension_numbers<[1], [0], [0], [1], [0, 0, 1, 1], [], []>} : vector<2x128xbf16>, vector<128x256xbf16>, vector<2x256xf32> -> vector<2x256xf32>
    %169 = arith.addf %166, %168 : vector<2x256xf32>
    %170 = vector.extract_strided_slice %169 {offsets = [0, 0], sizes = [2, 128], strides = [1, 1]} : vector<2x256xf32> to vector<2x128xf32>
    %171 = math.tanh %170 : vector<2x128xf32>
    %172 = vector.extract_strided_slice %169 {offsets = [0, 128], sizes = [2, 128], strides = [1, 1]} : vector<2x256xf32> to vector<2x128xf32>
    %173 = arith.negf %172 : vector<2x128xf32>
    %174 = math.exp %173 : vector<2x128xf32>
    %cst_40 = arith.constant 1.000000e+00 : f32
    %175 = vector.broadcast %cst_40 : f32 to vector<2x128xf32>
    %176 = arith.addf %175, %174 : vector<2x128xf32>
    %177 = arith.divf %175, %176 : vector<2x128xf32>
    %178 = arith.subf %171, %158 : vector<2x128xf32>
    %179 = arith.mulf %177, %178 : vector<2x128xf32>
    %180 = arith.addf %158, %179 : vector<2x128xf32>
    %cst_41 = arith.constant dense<0.000000e+00> : vector<2xf32>
    %181 = vector.multi_reduction <add>, %180, %cst_41 [1] : vector<2x128xf32> to vector<2xf32>
    %182 = vector.shape_cast %181 : vector<2xf32> to vector<2x1xf32>
    %cst_42 = arith.constant 3.125000e-02 : f32
    %183 = vector.broadcast %cst_42 : f32 to vector<2x1xf32>
    %184 = arith.mulf %182, %183 : vector<2x1xf32>
    %185 = arith.mulf %180, %180 : vector<2x128xf32>
    %cst_43 = arith.constant dense<0.000000e+00> : vector<2xf32>
    %186 = vector.multi_reduction <add>, %185, %cst_43 [1] : vector<2x128xf32> to vector<2xf32>
    %187 = vector.shape_cast %186 : vector<2xf32> to vector<2x1xf32>
    %cst_44 = arith.constant 3.125000e-02 : f32
    %188 = vector.broadcast %cst_44 : f32 to vector<2x1xf32>
    %189 = arith.mulf %187, %188 : vector<2x1xf32>
    %190 = arith.mulf %184, %184 : vector<2x1xf32>
    %191 = arith.subf %189, %190 : vector<2x1xf32>
    %192 = vector.broadcast %184 : vector<2x1xf32> to vector<2x128xf32>
    %193 = arith.subf %180, %192 : vector<2x128xf32>
    %cst_45 = arith.constant 9.99999974E-6 : f32
    %194 = vector.broadcast %cst_45 : f32 to vector<2x1xf32>
    %195 = arith.addf %191, %194 : vector<2x1xf32>
    %196 = math.rsqrt %195 : vector<2x1xf32>
    %197 = vector.broadcast %196 : vector<2x1xf32> to vector<2x128xf32>
    %198 = arith.mulf %193, %197 : vector<2x128xf32>
    %199 = vector.broadcast %4 : vector<1x128xf32> to vector<2x128xf32>
    %200 = arith.mulf %198, %199 : vector<2x128xf32>
    %201 = vector.broadcast %5 : vector<1x128xf32> to vector<2x128xf32>
    %202 = arith.addf %200, %201 : vector<2x128xf32>
    %203 = vector.extract_strided_slice %165 {offsets = [2, 0], sizes = [2, 256], strides = [1, 1]} : vector<8x256xf32> to vector<2x256xf32>
    %204 = arith.truncf %202 : vector<2x128xf32> to vector<2x128xbf16>
    %cst_46 = arith.constant dense<0.000000e+00> : vector<2x256xf32>
    %205 = tpu.matmul %204, %3, %cst_46 {dimension_numbers = #tpu.dot_dimension_numbers<[1], [0], [0], [1], [0, 0, 1, 1], [], []>} : vector<2x128xbf16>, vector<128x256xbf16>, vector<2x256xf32> -> vector<2x256xf32>
    %206 = arith.addf %203, %205 : vector<2x256xf32>
    %207 = vector.extract_strided_slice %206 {offsets = [0, 0], sizes = [2, 128], strides = [1, 1]} : vector<2x256xf32> to vector<2x128xf32>
    %208 = math.tanh %207 : vector<2x128xf32>
    %209 = vector.extract_strided_slice %206 {offsets = [0, 128], sizes = [2, 128], strides = [1, 1]} : vector<2x256xf32> to vector<2x128xf32>
    %210 = arith.negf %209 : vector<2x128xf32>
    %211 = math.exp %210 : vector<2x128xf32>
    %cst_47 = arith.constant 1.000000e+00 : f32
    %212 = vector.broadcast %cst_47 : f32 to vector<2x128xf32>
    %213 = arith.addf %212, %211 : vector<2x128xf32>
    %214 = arith.divf %212, %213 : vector<2x128xf32>
    %215 = arith.subf %208, %202 : vector<2x128xf32>
    %216 = arith.mulf %214, %215 : vector<2x128xf32>
    %217 = arith.addf %202, %216 : vector<2x128xf32>
    %cst_48 = arith.constant dense<0.000000e+00> : vector<2xf32>
    %218 = vector.multi_reduction <add>, %217, %cst_48 [1] : vector<2x128xf32> to vector<2xf32>
    %219 = vector.shape_cast %218 : vector<2xf32> to vector<2x1xf32>
    %cst_49 = arith.constant 3.125000e-02 : f32
    %220 = vector.broadcast %cst_49 : f32 to vector<2x1xf32>
    %221 = arith.mulf %219, %220 : vector<2x1xf32>
    %222 = arith.mulf %217, %217 : vector<2x128xf32>
    %cst_50 = arith.constant dense<0.000000e+00> : vector<2xf32>
    %223 = vector.multi_reduction <add>, %222, %cst_50 [1] : vector<2x128xf32> to vector<2xf32>
    %224 = vector.shape_cast %223 : vector<2xf32> to vector<2x1xf32>
    %cst_51 = arith.constant 3.125000e-02 : f32
    %225 = vector.broadcast %cst_51 : f32 to vector<2x1xf32>
    %226 = arith.mulf %224, %225 : vector<2x1xf32>
    %227 = arith.mulf %221, %221 : vector<2x1xf32>
    %228 = arith.subf %226, %227 : vector<2x1xf32>
    %229 = vector.broadcast %221 : vector<2x1xf32> to vector<2x128xf32>
    %230 = arith.subf %217, %229 : vector<2x128xf32>
    %cst_52 = arith.constant 9.99999974E-6 : f32
    %231 = vector.broadcast %cst_52 : f32 to vector<2x1xf32>
    %232 = arith.addf %228, %231 : vector<2x1xf32>
    %233 = math.rsqrt %232 : vector<2x1xf32>
    %234 = vector.broadcast %233 : vector<2x1xf32> to vector<2x128xf32>
    %235 = arith.mulf %230, %234 : vector<2x128xf32>
    %236 = vector.broadcast %4 : vector<1x128xf32> to vector<2x128xf32>
    %237 = arith.mulf %235, %236 : vector<2x128xf32>
    %238 = vector.broadcast %5 : vector<1x128xf32> to vector<2x128xf32>
    %239 = arith.addf %237, %238 : vector<2x128xf32>
    %240 = vector.extract_strided_slice %165 {offsets = [4, 0], sizes = [2, 256], strides = [1, 1]} : vector<8x256xf32> to vector<2x256xf32>
    %241 = arith.truncf %239 : vector<2x128xf32> to vector<2x128xbf16>
    %cst_53 = arith.constant dense<0.000000e+00> : vector<2x256xf32>
    %242 = tpu.matmul %241, %3, %cst_53 {dimension_numbers = #tpu.dot_dimension_numbers<[1], [0], [0], [1], [0, 0, 1, 1], [], []>} : vector<2x128xbf16>, vector<128x256xbf16>, vector<2x256xf32> -> vector<2x256xf32>
    %243 = arith.addf %240, %242 : vector<2x256xf32>
    %244 = vector.extract_strided_slice %243 {offsets = [0, 0], sizes = [2, 128], strides = [1, 1]} : vector<2x256xf32> to vector<2x128xf32>
    %245 = math.tanh %244 : vector<2x128xf32>
    %246 = vector.extract_strided_slice %243 {offsets = [0, 128], sizes = [2, 128], strides = [1, 1]} : vector<2x256xf32> to vector<2x128xf32>
    %247 = arith.negf %246 : vector<2x128xf32>
    %248 = math.exp %247 : vector<2x128xf32>
    %cst_54 = arith.constant 1.000000e+00 : f32
    %249 = vector.broadcast %cst_54 : f32 to vector<2x128xf32>
    %250 = arith.addf %249, %248 : vector<2x128xf32>
    %251 = arith.divf %249, %250 : vector<2x128xf32>
    %252 = arith.subf %245, %239 : vector<2x128xf32>
    %253 = arith.mulf %251, %252 : vector<2x128xf32>
    %254 = arith.addf %239, %253 : vector<2x128xf32>
    %cst_55 = arith.constant dense<0.000000e+00> : vector<2xf32>
    %255 = vector.multi_reduction <add>, %254, %cst_55 [1] : vector<2x128xf32> to vector<2xf32>
    %256 = vector.shape_cast %255 : vector<2xf32> to vector<2x1xf32>
    %cst_56 = arith.constant 3.125000e-02 : f32
    %257 = vector.broadcast %cst_56 : f32 to vector<2x1xf32>
    %258 = arith.mulf %256, %257 : vector<2x1xf32>
    %259 = arith.mulf %254, %254 : vector<2x128xf32>
    %cst_57 = arith.constant dense<0.000000e+00> : vector<2xf32>
    %260 = vector.multi_reduction <add>, %259, %cst_57 [1] : vector<2x128xf32> to vector<2xf32>
    %261 = vector.shape_cast %260 : vector<2xf32> to vector<2x1xf32>
    %cst_58 = arith.constant 3.125000e-02 : f32
    %262 = vector.broadcast %cst_58 : f32 to vector<2x1xf32>
    %263 = arith.mulf %261, %262 : vector<2x1xf32>
    %264 = arith.mulf %258, %258 : vector<2x1xf32>
    %265 = arith.subf %263, %264 : vector<2x1xf32>
    %266 = vector.broadcast %258 : vector<2x1xf32> to vector<2x128xf32>
    %267 = arith.subf %254, %266 : vector<2x128xf32>
    %cst_59 = arith.constant 9.99999974E-6 : f32
    %268 = vector.broadcast %cst_59 : f32 to vector<2x1xf32>
    %269 = arith.addf %265, %268 : vector<2x1xf32>
    %270 = math.rsqrt %269 : vector<2x1xf32>
    %271 = vector.broadcast %270 : vector<2x1xf32> to vector<2x128xf32>
    %272 = arith.mulf %267, %271 : vector<2x128xf32>
    %273 = vector.broadcast %4 : vector<1x128xf32> to vector<2x128xf32>
    %274 = arith.mulf %272, %273 : vector<2x128xf32>
    %275 = vector.broadcast %5 : vector<1x128xf32> to vector<2x128xf32>
    %276 = arith.addf %274, %275 : vector<2x128xf32>
    %277 = vector.extract_strided_slice %165 {offsets = [6, 0], sizes = [2, 256], strides = [1, 1]} : vector<8x256xf32> to vector<2x256xf32>
    %278 = arith.truncf %276 : vector<2x128xf32> to vector<2x128xbf16>
    %cst_60 = arith.constant dense<0.000000e+00> : vector<2x256xf32>
    %279 = tpu.matmul %278, %3, %cst_60 {dimension_numbers = #tpu.dot_dimension_numbers<[1], [0], [0], [1], [0, 0, 1, 1], [], []>} : vector<2x128xbf16>, vector<128x256xbf16>, vector<2x256xf32> -> vector<2x256xf32>
    %280 = arith.addf %277, %279 : vector<2x256xf32>
    %281 = vector.extract_strided_slice %280 {offsets = [0, 0], sizes = [2, 128], strides = [1, 1]} : vector<2x256xf32> to vector<2x128xf32>
    %282 = math.tanh %281 : vector<2x128xf32>
    %283 = vector.extract_strided_slice %280 {offsets = [0, 128], sizes = [2, 128], strides = [1, 1]} : vector<2x256xf32> to vector<2x128xf32>
    %284 = arith.negf %283 : vector<2x128xf32>
    %285 = math.exp %284 : vector<2x128xf32>
    %cst_61 = arith.constant 1.000000e+00 : f32
    %286 = vector.broadcast %cst_61 : f32 to vector<2x128xf32>
    %287 = arith.addf %286, %285 : vector<2x128xf32>
    %288 = arith.divf %286, %287 : vector<2x128xf32>
    %289 = arith.subf %282, %276 : vector<2x128xf32>
    %290 = arith.mulf %288, %289 : vector<2x128xf32>
    %291 = arith.addf %276, %290 : vector<2x128xf32>
    %cst_62 = arith.constant dense<0.000000e+00> : vector<2xf32>
    %292 = vector.multi_reduction <add>, %291, %cst_62 [1] : vector<2x128xf32> to vector<2xf32>
    %293 = vector.shape_cast %292 : vector<2xf32> to vector<2x1xf32>
    %cst_63 = arith.constant 3.125000e-02 : f32
    %294 = vector.broadcast %cst_63 : f32 to vector<2x1xf32>
    %295 = arith.mulf %293, %294 : vector<2x1xf32>
    %296 = arith.mulf %291, %291 : vector<2x128xf32>
    %cst_64 = arith.constant dense<0.000000e+00> : vector<2xf32>
    %297 = vector.multi_reduction <add>, %296, %cst_64 [1] : vector<2x128xf32> to vector<2xf32>
    %298 = vector.shape_cast %297 : vector<2xf32> to vector<2x1xf32>
    %cst_65 = arith.constant 3.125000e-02 : f32
    %299 = vector.broadcast %cst_65 : f32 to vector<2x1xf32>
    %300 = arith.mulf %298, %299 : vector<2x1xf32>
    %301 = arith.mulf %295, %295 : vector<2x1xf32>
    %302 = arith.subf %300, %301 : vector<2x1xf32>
    %303 = vector.broadcast %295 : vector<2x1xf32> to vector<2x128xf32>
    %304 = arith.subf %291, %303 : vector<2x128xf32>
    %cst_66 = arith.constant 9.99999974E-6 : f32
    %305 = vector.broadcast %cst_66 : f32 to vector<2x1xf32>
    %306 = arith.addf %302, %305 : vector<2x1xf32>
    %307 = math.rsqrt %306 : vector<2x1xf32>
    %308 = vector.broadcast %307 : vector<2x1xf32> to vector<2x128xf32>
    %309 = arith.mulf %304, %308 : vector<2x128xf32>
    %310 = vector.broadcast %4 : vector<1x128xf32> to vector<2x128xf32>
    %311 = arith.mulf %309, %310 : vector<2x128xf32>
    %312 = vector.broadcast %5 : vector<1x128xf32> to vector<2x128xf32>
    %313 = arith.addf %311, %312 : vector<2x128xf32>
    %314 = tpu.concatenate %202, %239, %276, %313 in 0 : vector<2x128xf32>, vector<2x128xf32>, vector<2x128xf32>, vector<2x128xf32> -> vector<8x128xf32>
    %315 = arith.index_cast %163 : i32 to index
    %c0_67 = arith.constant 0 : index
    %316 = vector.load %arg4[%315, %c0_67] : memref<16x128xf32, #tpu.memory_space<vmem>>, vector<8x128xf32>
    tpu.vector_store %arg4[%315, %c0_67], %314 {strides = array<i32>} : memref<16x128xf32, #tpu.memory_space<vmem>>, vector<8x128xf32>,
    %c2_i32 = arith.constant 2 : i32
    %c0_68 = arith.constant 0 : index
    %c0_69 = arith.constant 0 : index
    %317 = vector.load %arg5[%c0_68, %c0_69] : memref<2x128xf32, #tpu.memory_space<vmem>>, vector<2x128xf32>
    tpu.vector_store %arg5[%c0_68, %c0_69], %313 {strides = array<i32>} : memref<2x128xf32, #tpu.memory_space<vmem>>, vector<2x128xf32>,
    return
  }
  func.func @transform_0(%arg0: i32) -> (i32, i32) {
    %c0_i32 = arith.constant 0 : i32
    %c0_i32_0 = arith.constant 0 : i32
    return %arg0, %c0_i32 : i32, i32
  }
  func.func @transform_1(%arg0: i32) -> (i32, i32) {
    %c0_i32 = arith.constant 0 : i32
    %c0_i32_0 = arith.constant 0 : i32
    %c0_i32_1 = arith.constant 0 : i32
    return %c0_i32, %c0_i32_0 : i32, i32
  }
  func.func @transform_2(%arg0: i32) -> (i32, i32) {
    %c0_i32 = arith.constant 0 : i32
    %c0_i32_0 = arith.constant 0 : i32
    %c0_i32_1 = arith.constant 0 : i32
    return %c0_i32, %c0_i32_0 : i32, i32
  }
  func.func @transform_3(%arg0: i32) -> (i32, i32) {
    %c0_i32 = arith.constant 0 : i32
    %c0_i32_0 = arith.constant 0 : i32
    return %arg0, %c0_i32 : i32, i32
  }
}

</mosaic_0001>

<bundles_post_ra>
// kernel: tpu_custom_call.1
= control target key start
LH: loop header
LB: loop body
LE: loop exit
PB: predicated region body
PF: predicated region fallthrough
CT: control target
= control target key end

     0   :  { %8 = vsyncpa [#allocation4], 0  ;;  %s1434_s0 = inlined_call_operand.hbm [shape: f32[16,256], index: 0, kind: input, shape index: {}]   ;;  %s1435_s1 = inlined_call_operand.hbm [shape: bf16[128,256], index: 1, kind: input, shape index: {}]   ;;  %s1436_s2 = inlined_call_operand.hbm [shape: f32[8,128], index: 2, kind: input, shape index: {}]   ;;  %s1437_s3 = inlined_call_operand.hbm [shape: f32[16,128], index: 3, kind: output, shape index: {}]  }
   0x1   :  { %9 = vsyncpa [#allocation7], 0 }
   0x2   :  { %10 = vsyncpa [#allocation5], 0  ;;  %s1081_s12 = smov [#allocation6]   ;;  %s987_s16 = scalar_lea.hbm %s1435_s1, 2048 }
   0x3   :  { %s28_s13 = sshll.u32 %s1081_s12, 4  ;;  %p988_p0 = scmp.ne.s32.totalorder %s1435_s1, %s987_s16  ;;  %s29_s13 = int_to_ptr.vmem [resolvable:$true] %s28_s13 }
   0x4   :  { %p991_p1 = scmp.lt.u32.totalorder %s987_s16, %s1435_s1 }
   0x6   :  { %p993_p2 = pnand %p991_p1, %p988_p0 }
   0x8   :  { %996 = shalt.err (!%p993_p2)
}
   0x9   :  { %s997_s21 = scalar_lea.vmem %s29_s13, 2048  ;;  %p1002_p4 = scmp.lt.s32.totalorder %s29_s13, %s29_s13 }
   0xa   :  { %p998_p3 = scmp.ne.s32.totalorder %s29_s13, %s997_s21  ;;  %p1003_p5 = scmp.lt.s32.totalorder %s997_s21, %s997_s21 }
   0xc   :  { %p1004_p6 = por %p1003_p5, %p1002_p4 }
   0xe   :  { %p1005_p7 = pnand %p1004_p6, %p998_p3 }
  0x10   :  { %1008 = shalt.err (!%p1005_p7)
}
  0x11   :  { %s1082_s22 = smov 128   ;;  %s1083_s23 = smov 8  }
  0x12   :  { %34 = dma.hbm_to_vmem [thread:$0]  %s1435_s1, 2048, %s29_s13, [#allocation7], %s1082_s22, %s1082_s22, %s1083_s23  }
  0x13   :  { %s1084_s26 = smov [#allocation3]   ;;  %s1009_s30 = scalar_lea.hbm %s1434_s0, 512 }
  0x14   :  { %s16_s27 = sshll.u32 %s1084_s26, 4  ;;  %p1010_p8 = scmp.ne.s32.totalorder %s1434_s0, %s1009_s30  ;;  %s17_s27 = int_to_ptr.vmem [resolvable:$true] %s16_s27 }
  0x15   :  { %p1013_p9 = scmp.lt.u32.totalorder %s1009_s30, %s1434_s0 }
  0x17   :  { %p1015_p10 = pnand %p1013_p9, %p1010_p8 }
  0x19   :  { %1018 = shalt.err (!%p1015_p10)
}
  0x1a   :  { %s1019_s8 = scalar_lea.vmem %s17_s27, 512  ;;  %p1024_p12 = scmp.lt.s32.totalorder %s17_s27, %s17_s27 }
  0x1b   :  { %p1020_p11 = scmp.ne.s32.totalorder %s17_s27, %s1019_s8  ;;  %p1025_p13 = scmp.lt.s32.totalorder %s1019_s8, %s1019_s8 }
  0x1d   :  { %p1026_p0 = por %p1025_p13, %p1024_p12 }
  0x1f   :  { %p1027_p1 = pnand %p1026_p0, %p1020_p11 }
  0x21   :  { %1030 = shalt.err (!%p1027_p1)
}
  0x22   :  { %s1085_s1 = smov 256   ;;  %s1086_s9 = smov 16  }
  0x23   :  { %22 = dma.hbm_to_vmem [thread:$0]  %s1434_s0, 512, %s17_s27, [#allocation4], %s1085_s1, %s1085_s1, %s1086_s9  }
  0x24   :  { %s1087_s12 = smov [#allocation8]   ;;  %s1031_s16 = scalar_lea.hbm %s1436_s2, 128 }
  0x25   :  { %s41_s13 = sshll.u32 %s1087_s12, 4  ;;  %p1032_p2 = scmp.ne.s32.totalorder %s1436_s2, %s1031_s16  ;;  %s42_s13 = int_to_ptr.vmem [resolvable:$true] %s41_s13 }
  0x26   :  { %p1035_p3 = scmp.lt.u32.totalorder %s1031_s16, %s1436_s2 }
  0x28   :  { %p1037_p4 = pnand %p1035_p3, %p1032_p2 }
  0x2a   :  { %1040 = shalt.err (!%p1037_p4)
}
  0x2b   :  { %s1041_s21 = scalar_lea.vmem %s42_s13, 128  ;;  %p1046_p6 = scmp.lt.s32.totalorder %s42_s13, %s42_s13 }
  0x2c   :  { %p1042_p5 = scmp.ne.s32.totalorder %s42_s13, %s1041_s21  ;;  %p1047_p7 = scmp.lt.s32.totalorder %s1041_s21, %s1041_s21 }
  0x2e   :  { %p1048_p8 = por %p1047_p7, %p1046_p6 }
  0x30   :  { %p1049_p9 = pnand %p1048_p8, %p1042_p5 }
  0x32   :  { %1052 = shalt.err (!%p1049_p9)
}
  0x33   :  { %44 = dma.hbm_to_vmem [thread:$0]  %s1436_s2, 128, %s42_s13, [#allocation7]  }
  0x34   :  { %1075 = dma.done.wait [#allocation4], 512  }
  0x35   :  { %1076 = vsyncadd [#allocation4], 4294966784 }
  0x36   :  { %1077 = dma.done.wait [#allocation7], 2176  }
  0x37   :  { %1078 = vsyncadd [#allocation7], 4294965120  ;;  %v1088_v0 = vmov 0   ;;  %v1089_v1 = vmov 0.0   ;;  %v1152_v2 = vld [vmem:[#allocation6 + $0x4] ss:$8 sps:$4 sm:$0xff]  }
  0x38   :  { %197 = vmatprep.mubr.bf16.mxu0 %v1088_v0  ;;  %59 = vst [vmem:[#allocation2] sm:$0x3] %v1089_v1  ;;  %277 = vmatprep.mubr.bf16.mxu1 %v1088_v0  ;;  %v1154_v3 = vld [vmem:[#allocation6] ss:$8 sps:$4 sm:$0xff]   ;;  %v1157_v4 = vld [vmem:[#allocation6 + $0x14] ss:$8 sps:$4 sm:$0xff]  }
  0x39   :  { %165 = vmatprep.subr.bf16.mxu0 %v1152_v2  ;;  %245 = vmatprep.subr.bf16.mxu1 %v1152_v2  ;;  %v1161_v5 = vld [vmem:[#allocation6 + $0x10] ss:$8 sps:$4 sm:$0xff]   ;;  %v1165_v6 = vld [vmem:[#allocation6 + $0x24] ss:$8 sps:$4 sm:$0xff]   ;;  %v1169_v7 = vld [vmem:[#allocation6 + $0x20] ss:$8 sps:$4 sm:$0xff]  }
  0x3a   :  { %166 = vmatpush1.bf16.msra.mxu0 %v1154_v3  ;;  %246 = vmatpush1.bf16.msra.mxu1 %v1154_v3  ;;  %v1173_v8 = vld [vmem:[#allocation6 + $0x34] ss:$8 sps:$4 sm:$0xff]   ;;  %v1177_v9 = vld [vmem:[#allocation6 + $0x30] ss:$8 sps:$4 sm:$0xff]   ;;  %v1181_v10 = vld [vmem:[#allocation6 + $0x44] ss:$8 sps:$4 sm:$0xff]  }
  0x3b   :  { %167 = vmatprep.subr.bf16.mxu0 %v1157_v4  ;;  %247 = vmatprep.subr.bf16.mxu1 %v1157_v4  ;;  %v1185_v11 = vld [vmem:[#allocation6 + $0x40] ss:$8 sps:$4 sm:$0xff]   ;;  %v1189_v12 = vld [vmem:[#allocation6 + $0x54] ss:$8 sps:$4 sm:$0xff]   ;;  %v1193_v13 = vld [vmem:[#allocation6 + $0x50] ss:$8 sps:$4 sm:$0xff]  }
  0x3c   :  { %v1197_v14 = vld [vmem:[#allocation6 + $0x64] ss:$8 sps:$4 sm:$0xff]   ;;  %v1201_v15 = vld [vmem:[#allocation6 + $0x60] ss:$8 sps:$4 sm:$0xff]   ;;  %v1205_v16 = vld [vmem:[#allocation6 + $0x74] ss:$8 sps:$4 sm:$0xff]  }
  0x3d   :  { %v1209_v17 = vld [vmem:[#allocation6 + $0x70] ss:$8 sps:$4 sm:$0xff]   ;;  %v1235_v20 = vld [vmem:[#allocation3 + $0x8] sm:$0xff]  ;;  %v1238_v27 = vld [vmem:[#allocation3] sm:$0xff]  ;;  %vm218_vm0 = vcmask 1041408   ;;  %vm501_vm1 = vcmask 1043456  }
  0x3e   :  { %168 = vmatpush1.bf16.msra.mxu0 %v1161_v5  ;;  %248 = vmatpush1.bf16.msra.mxu1 %v1161_v5  ;;  %v1243_v48 = vld [vmem:[#allocation8] ss:$0 sm:$0xff]  ;;  %v1245_v50 = vld [vmem:[#allocation8 + $0x1] ss:$0 sm:$0xff]  ;;  %vm503_vm2 = vcmask 1045504   ;;  %s1090_s2 = smov [#allocation9]  }
  0x3f   :  { %169 = vmatprep.subr.bf16.mxu0 %v1165_v6  ;;  %249 = vmatprep.subr.bf16.mxu1 %v1165_v6  ;;  %v78_v18 = vld [vmem:[#allocation2] sm:$0x3]  ;;  %s849_s25 = sshll.u32 %s1090_s2, 4  ;;  %s850_s25 = int_to_ptr.vmem [resolvable:$true] %s849_s25 }
  0x40   :  { %v84_v19 = vpack.c.bf16 %v78_v18, %v78_v18  ;;  %s1053_s26 = scalar_lea.vmem %s850_s25, 256  ;;  %p1058_p11 = scmp.lt.s32.totalorder %s850_s25, %s850_s25 }
  0x41   :  { %p1054_p10 = scmp.ne.s32.totalorder %s850_s25, %s1053_s26  ;;  %p1059_p12 = scmp.lt.s32.totalorder %s1053_s26, %s1053_s26 }
  0x42   :  { %170 = vmatpush1.bf16.msra.mxu0 %v1169_v7  ;;  %250 = vmatpush1.bf16.msra.mxu1 %v1169_v7 }
  0x43   :  { %171 = vmatprep.subr.bf16.mxu0 %v1173_v8  ;;  %251 = vmatprep.subr.bf16.mxu1 %v1173_v8  ;;  %p1060_p13 = por %p1059_p12, %p1058_p11 }
  0x45   :  { %p1061_p0 = pnand %p1060_p13, %p1054_p10 }
  0x46   :  { %172 = vmatpush1.bf16.msra.mxu0 %v1177_v9  ;;  %252 = vmatpush1.bf16.msra.mxu1 %v1177_v9 }
  0x47   :  { %173 = vmatprep.subr.bf16.mxu0 %v1181_v10  ;;  %253 = vmatprep.subr.bf16.mxu1 %v1181_v10 }
  0x4a   :  { %174 = vmatpush1.bf16.msra.mxu0 %v1185_v11  ;;  %254 = vmatpush1.bf16.msra.mxu1 %v1185_v11 }
  0x4b   :  { %175 = vmatprep.subr.bf16.mxu0 %v1189_v12  ;;  %255 = vmatprep.subr.bf16.mxu1 %v1189_v12 }
  0x4e   :  { %176 = vmatpush1.bf16.msra.mxu0 %v1193_v13  ;;  %256 = vmatpush1.bf16.msra.mxu1 %v1193_v13 }
  0x4f   :  { %177 = vmatprep.subr.bf16.mxu0 %v1197_v14  ;;  %257 = vmatprep.subr.bf16.mxu1 %v1197_v14 }
  0x52   :  { %178 = vmatpush1.bf16.msra.mxu0 %v1201_v15  ;;  %258 = vmatpush1.bf16.msra.mxu1 %v1201_v15 }
  0x53   :  { %179 = vmatprep.subr.bf16.mxu0 %v1205_v16  ;;  %259 = vmatprep.subr.bf16.mxu1 %v1205_v16 }
  0x56   :  { %180 = vmatpush1.bf16.msra.mxu0 %v1209_v17  ;;  %260 = vmatpush1.bf16.msra.mxu1 %v1209_v17 }
  0x57   :  { %328 = vmatprep.subr.bf16.mxu0 %v1152_v2  ;;  %411 = vmatprep.subr.bf16.mxu1 %v1152_v2 }
  0x59   :  { %198 = vmatmul.mubr.bf16.vlgmr.msra.gmra.mrb[0].mxu0 %v84_v19 }
  0x5a   :  { %329 = vmatpush1.bf16.msra.mxu0 %v1154_v3  ;;  %360 = vmatprep.mubr.bf16.mxu0 %v1088_v0 }
  0x5b   :  { %330 = vmatprep.subr.bf16.mxu0 %v1157_v4 }
  0x5e   :  { %331 = vmatpush1.bf16.msra.mxu0 %v1161_v5 }
  0x5f   :  { %332 = vmatprep.subr.bf16.mxu0 %v1165_v6 }
  0x62   :  { %333 = vmatpush1.bf16.msra.mxu0 %v1169_v7 }
  0x63   :  { %334 = vmatprep.subr.bf16.mxu0 %v1173_v8 }
  0x66   :  { %335 = vmatpush1.bf16.msra.mxu0 %v1177_v9 }
  0x67   :  { %336 = vmatprep.subr.bf16.mxu0 %v1181_v10 }
  0x6a   :  { %337 = vmatpush1.bf16.msra.mxu0 %v1185_v11 }
  0x6b   :  { %338 = vmatprep.subr.bf16.mxu0 %v1189_v12 }
  0x6e   :  { %339 = vmatpush1.bf16.msra.mxu0 %v1193_v13 }
  0x6f   :  { %340 = vmatprep.subr.bf16.mxu0 %v1197_v14 }
  0x72   :  { %341 = vmatpush1.bf16.msra.mxu0 %v1201_v15 }
  0x73   :  { %342 = vmatprep.subr.bf16.mxu0 %v1205_v16 }
  0x76   :  { %343 = vmatpush1.bf16.msra.mxu0 %v1209_v17 }
  0x77   :  { %512 = vmatprep.subr.bf16.mxu0 %v1152_v2 }
 0x12c   :  { %v199_v21 = vpop.f32.mrb[0].mxu0 }
 0x12d   :  { %v201_v22 = vpop.f32.mrb[1].mxu0  ;;  %v206_v28 = vadd.f32 %v199_v21, %v1238_v27 }
 0x12e   :  { %v207_v23 = vadd.f32 %v201_v22, %v1235_v20  ;;  %v203_v24 = vpop.f32.mrb[2].mxu0 }
 0x12f   :  { %v204_v25 = vpop.f32.mrb[3].mxu0 }
 0x130   :  { %v879_v26 = vmul.f32 -1.442695, %v207_v23 }
 0x132   :  { %923 = vpow2.f32 %v879_v26 }
 0x133   :  { %925 = vtanh.f32 %v206_v28 }
 0x13c   :  { %v924_v29 = vpop.eup %923 }
 0x13d   :  { %v212_v30 = vadd.f32 1.0, %v924_v29  ;;  %v926_v31 = vpop.eup %925 }
 0x13e   :  { %v215_v32 = vsub.f32 %v926_v31, %v78_v18 }
 0x13f   :  { %927 = vrcp.f32 %v212_v30 }
 0x149   :  { %v928_v33 = vpop.eup %927 }
 0x14a   :  { %v216_v34 = vmul.f32 %v928_v33, %v215_v32 }
 0x14c   :  { %v217_v35 = vadd.f32 %v216_v34, %v78_v18 }
 0x14e   :  { %v219_v36 = vsel %vm218_vm0, %v217_v35, 0.0  ;;  %v223_v37 = vmul.f32 %v217_v35, %v217_v35 }
 0x14f   :  { %220 = vadd.xlane.f32.xlu0 %v219_v36 }
 0x150   :  { %v224_v38 = vsel %vm218_vm0, %v223_v37, 0.0 }
 0x153   :  { %225 = vadd.xlane.f32.xlu0 %v224_v38 }
 0x1dc   :  { %v221_v39 = vpop.xlane.xlu0 %220 }
 0x1dd   :  { %v222_v40 = vmul.f32 0.03125, %v221_v39 }
 0x1df   :  { %v228_v42 = vmul.f32 %v222_v40, %v222_v40  ;;  %v230_v46 = vsub.f32 %v217_v35, %v222_v40 }
 0x1e0   :  { %v226_v41 = vpop.xlane.xlu0 %225 }
 0x1e1   :  { %v227_v43 = vmul.f32 0.03125, %v226_v41 }
 0x1e3   :  { %v229_v44 = vsub.f32 %v227_v43, %v228_v42 }
 0x1e5   :  { %v231_v45 = vadd.f32 1e-05, %v229_v44 }
 0x1e7   :  { %929 = vrsqrt.f32 %v231_v45 }
 0x1f1   :  { %v930_v47 = vpop.eup %929 }
 0x1f2   :  { %v233_v49 = vmul.f32 %v930_v47, %v230_v46 }
 0x1f4   :  { %v238_v51 = vmul.f32 %v1243_v48, %v233_v49 }
 0x1f6   :  { %v1249_v52 = vadd.f32 %v1245_v50, %v238_v51 }
 0x1f8   :  { %v244_v53 = vpack.c.bf16 %v1249_v52, %v1249_v52  ;;  %v302_v19 = vrot.slane %v1249_v52, 6 }
 0x1fa   :  { %278 = vmatmul.mubr.bf16.vlgmr.msra.gmra.mrb[0].mxu1 %v244_v53 }
 0x1fb   :  { %412 = vmatpush1.bf16.msra.mxu1 %v1154_v3  ;;  %443 = vmatprep.mubr.bf16.mxu1 %v1088_v0 }
 0x1fc   :  { %413 = vmatprep.subr.bf16.mxu1 %v1157_v4 }
 0x1ff   :  { %414 = vmatpush1.bf16.msra.mxu1 %v1161_v5 }
 0x200   :  { %415 = vmatprep.subr.bf16.mxu1 %v1165_v6 }
 0x203   :  { %416 = vmatpush1.bf16.msra.mxu1 %v1169_v7 }
 0x204   :  { %417 = vmatprep.subr.bf16.mxu1 %v1173_v8 }
 0x207   :  { %418 = vmatpush1.bf16.msra.mxu1 %v1177_v9 }
 0x208   :  { %419 = vmatprep.subr.bf16.mxu1 %v1181_v10 }
 0x20b   :  { %420 = vmatpush1.bf16.msra.mxu1 %v1185_v11 }
 0x20c   :  { %421 = vmatprep.subr.bf16.mxu1 %v1189_v12 }
 0x20f   :  { %422 = vmatpush1.bf16.msra.mxu1 %v1193_v13 }
 0x210   :  { %423 = vmatprep.subr.bf16.mxu1 %v1197_v14 }
 0x213   :  { %424 = vmatpush1.bf16.msra.mxu1 %v1201_v15 }
 0x214   :  { %425 = vmatprep.subr.bf16.mxu1 %v1205_v16 }
 0x217   :  { %426 = vmatpush1.bf16.msra.mxu1 %v1209_v17 }
 0x218   :  { %583 = vmatprep.subr.bf16.mxu1 %v1152_v2 }
 0x2cd   :  { %v279_v54 = vpop.f32.mrb[0].mxu1 }
 0x2ce   :  { %v281_v55 = vpop.f32.mrb[1].mxu1  ;;  %v288_v61 = vrot.slane %v279_v54, 6 }
 0x2cf   :  { %v289_v56 = vrot.slane %v281_v55, 6  ;;  %v283_v57 = vpop.f32.mrb[2].mxu1 }
 0x2d0   :  { %v284_v58 = vpop.f32.mrb[3].mxu1  ;;  %v292_v62 = vadd.f32 %v288_v61, %v1238_v27 }
 0x2d1   :  { %v293_v59 = vadd.f32 %v289_v56, %v1235_v20 }
 0x2d3   :  { %v882_v60 = vmul.f32 -1.442695, %v293_v59 }
 0x2d5   :  { %931 = vpow2.f32 %v882_v60 }
 0x2d6   :  { %933 = vtanh.f32 %v292_v62 }
 0x2df   :  { %v932_v63 = vpop.eup %931 }
 0x2e0   :  { %v298_v1 = vadd.f32 1.0, %v932_v63  ;;  %v934_v18 = vpop.eup %933 }
 0x2e1   :  { %v304_v21 = vsub.f32 %v934_v18, %v302_v19 }
 0x2e2   :  { %935 = vrcp.f32 %v298_v1 }
 0x2ec   :  { %v936_v22 = vpop.eup %935 }
 0x2ed   :  { %v305_v23 = vmul.f32 %v936_v22, %v304_v21 }
 0x2ef   :  { %v307_v24 = vrot.slane %v305_v23, 2 }
 0x2f1   :  { %v309_v25 = vadd.f32 %v307_v24, %v1249_v52 }
 0x2f3   :  { %v310_v26 = vsel %vm218_vm0, %v309_v25, 0.0  ;;  %v314_v28 = vmul.f32 %v309_v25, %v309_v25 }
 0x2f4   :  { %311 = vadd.xlane.f32.xlu1 %v310_v26 }
 0x2f5   :  { %v315_v29 = vsel %vm218_vm0, %v314_v28, 0.0 }
 0x2f8   :  { %316 = vadd.xlane.f32.xlu1 %v315_v29 }
 0x381   :  { %v312_v30 = vpop.xlane.xlu1 %311 }
 0x382   :  { %v313_v31 = vmul.f32 0.03125, %v312_v30 }
 0x384   :  { %v319_v33 = vmul.f32 %v313_v31, %v313_v31  ;;  %v321_v37 = vsub.f32 %v309_v25, %v313_v31 }
 0x385   :  { %v317_v32 = vpop.xlane.xlu1 %316 }
 0x386   :  { %v318_v34 = vmul.f32 0.03125, %v317_v32 }
 0x388   :  { %v320_v35 = vsub.f32 %v318_v34, %v319_v33 }
 0x38a   :  { %v322_v36 = vadd.f32 1e-05, %v320_v35 }
 0x38c   :  { %937 = vrsqrt.f32 %v322_v36 }
 0x396   :  { %v938_v38 = vpop.eup %937 }
 0x397   :  { %v324_v39 = vmul.f32 %v938_v38, %v321_v37 }
 0x399   :  { %v325_v40 = vmul.f32 %v1243_v48, %v324_v39 }
 0x39b   :  { %v1278_v41 = vadd.f32 %v1245_v50, %v325_v40 }
 0x39d   :  { %v327_v42 = vpack.c.bf16 %v1278_v41, %v1278_v41  ;;  %v385_v58 = vrot.slane %v1278_v41, 4 }
 0x39f   :  { %361 = vmatmul.mubr.bf16.vlgmr.msra.gmra.mrb[4].mxu0 %v327_v42 }
 0x3a0   :  { %513 = vmatpush1.bf16.msra.mxu0 %v1154_v3  ;;  %544 = vmatprep.mubr.bf16.mxu0 %v1088_v0 }
 0x3a1   :  { %514 = vmatprep.subr.bf16.mxu0 %v1157_v4 }
 0x3a4   :  { %515 = vmatpush1.bf16.msra.mxu0 %v1161_v5 }
 0x3a5   :  { %516 = vmatprep.subr.bf16.mxu0 %v1165_v6 }
 0x3a8   :  { %517 = vmatpush1.bf16.msra.mxu0 %v1169_v7 }
 0x3a9   :  { %518 = vmatprep.subr.bf16.mxu0 %v1173_v8 }
 0x3ac   :  { %519 = vmatpush1.bf16.msra.mxu0 %v1177_v9 }
 0x3ad   :  { %520 = vmatprep.subr.bf16.mxu0 %v1181_v10 }
 0x3b0   :  { %521 = vmatpush1.bf16.msra.mxu0 %v1185_v11 }
 0x3b1   :  { %522 = vmatprep.subr.bf16.mxu0 %v1189_v12 }
 0x3b4   :  { %523 = vmatpush1.bf16.msra.mxu0 %v1193_v13 }
 0x3b5   :  { %524 = vmatprep.subr.bf16.mxu0 %v1197_v14 }
 0x3b8   :  { %525 = vmatpush1.bf16.msra.mxu0 %v1201_v15 }
 0x3b9   :  { %526 = vmatprep.subr.bf16.mxu0 %v1205_v16 }
 0x3bc   :  { %527 = vmatpush1.bf16.msra.mxu0 %v1209_v17 }
 0x3bd   :  { %666 = vmatprep.subr.bf16.mxu0 %v1152_v2 }
 0x472   :  { %v362_v43 = vpop.f32.mrb[4].mxu0 }
 0x473   :  { %v364_v44 = vpop.f32.mrb[5].mxu0  ;;  %v371_v53 = vrot.slane %v362_v43, 4 }
 0x474   :  { %v372_v45 = vrot.slane %v364_v44, 4  ;;  %v366_v46 = vpop.f32.mrb[6].mxu0 }
 0x475   :  { %v367_v47 = vpop.f32.mrb[7].mxu0  ;;  %v375_v54 = vadd.f32 %v371_v53, %v1238_v27 }
 0x476   :  { %v376_v49 = vadd.f32 %v372_v45, %v1235_v20 }
 0x478   :  { %v883_v51 = vmul.f32 -1.442695, %v376_v49 }
 0x47a   :  { %939 = vpow2.f32 %v883_v51 }
 0x47b   :  { %941 = vtanh.f32 %v375_v54 }
 0x484   :  { %v940_v55 = vpop.eup %939 }
 0x485   :  { %v381_v56 = vadd.f32 1.0, %v940_v55  ;;  %v942_v57 = vpop.eup %941 }
 0x486   :  { %v387_v59 = vsub.f32 %v942_v57, %v385_v58 }
 0x487   :  { %943 = vrcp.f32 %v381_v56 }
 0x491   :  { %v944_v60 = vpop.eup %943 }
 0x492   :  { %v388_v61 = vmul.f32 %v944_v60, %v387_v59 }
 0x494   :  { %v390_v62 = vrot.slane %v388_v61, 4 }
 0x496   :  { %v392_v63 = vadd.f32 %v390_v62, %v1278_v41 }
 0x498   :  { %v393_v1 = vsel %vm218_vm0, %v392_v63, 0.0  ;;  %v397_v18 = vmul.f32 %v392_v63, %v392_v63 }
 0x499   :  { %394 = vadd.xlane.f32.xlu0 %v393_v1 }
 0x49a   :  { %v398_v19 = vsel %vm218_vm0, %v397_v18, 0.0 }
 0x49b   :  { %399 = vadd.xlane.f32.xlu1 %v398_v19 }
 0x526   :  { %v395_v21 = vpop.xlane.xlu0 %394 }
 0x527   :  { %v396_v22 = vmul.f32 0.03125, %v395_v21 }
 0x528   :  { %v400_v23 = vpop.xlane.xlu1 %399 }
 0x529   :  { %v402_v24 = vmul.f32 %v396_v22, %v396_v22  ;;  %v401_v25 = vmul.f32 0.03125, %v400_v23  ;;  %v404_v29 = vsub.f32 %v392_v63, %v396_v22  ;;  %v493_v22 = vrot.slane %v1278_v41, 6 }
 0x52b   :  { %v403_v26 = vsub.f32 %v401_v25, %v402_v24 }
 0x52d   :  { %v405_v28 = vadd.f32 1e-05, %v403_v26 }
 0x52f   :  { %945 = vrsqrt.f32 %v405_v28  ;;  %v500_v28 = vsel %vm218_vm0, %v1249_v52, %v493_v22  ;;  %v1358_v52 = vld [vmem:[#allocation3 + $0x18] sm:$0xff] }
 0x539   :  { %v946_v30 = vpop.eup %945 }
 0x53a   :  { %v407_v31 = vmul.f32 %v946_v30, %v404_v29 }
 0x53c   :  { %v408_v32 = vmul.f32 %v1243_v48, %v407_v31 }
 0x53e   :  { %v1307_v33 = vadd.f32 %v1245_v50, %v408_v32 }
 0x540   :  { %v410_v34 = vpack.c.bf16 %v1307_v33, %v1307_v33  ;;  %v468_v49 = vrot.slane %v1307_v33, 2  ;;  %v495_v23 = vrot.slane %v1307_v33, 4 }
 0x542   :  { %444 = vmatmul.mubr.bf16.vlgmr.msra.gmra.mrb[4].mxu1 %v410_v34  ;;  %v502_v29 = vsel %vm501_vm1, %v500_v28, %v495_v23 }
 0x543   :  { %584 = vmatpush1.bf16.msra.mxu1 %v1154_v3  ;;  %615 = vmatprep.mubr.bf16.mxu1 %v1088_v0 }
 0x544   :  { %585 = vmatprep.subr.bf16.mxu1 %v1157_v4 }
 0x547   :  { %586 = vmatpush1.bf16.msra.mxu1 %v1161_v5 }
 0x548   :  { %587 = vmatprep.subr.bf16.mxu1 %v1165_v6 }
 0x54b   :  { %588 = vmatpush1.bf16.msra.mxu1 %v1169_v7 }
 0x54c   :  { %589 = vmatprep.subr.bf16.mxu1 %v1173_v8 }
 0x54f   :  { %590 = vmatpush1.bf16.msra.mxu1 %v1177_v9 }
 0x550   :  { %591 = vmatprep.subr.bf16.mxu1 %v1181_v10 }
 0x553   :  { %592 = vmatpush1.bf16.msra.mxu1 %v1185_v11 }
 0x554   :  { %593 = vmatprep.subr.bf16.mxu1 %v1189_v12 }
 0x557   :  { %594 = vmatpush1.bf16.msra.mxu1 %v1193_v13 }
 0x558   :  { %595 = vmatprep.subr.bf16.mxu1 %v1197_v14 }
 0x55b   :  { %596 = vmatpush1.bf16.msra.mxu1 %v1201_v15 }
 0x55c   :  { %597 = vmatprep.subr.bf16.mxu1 %v1205_v16 }
 0x55f   :  { %598 = vmatpush1.bf16.msra.mxu1 %v1209_v17 }
 0x560   :  { %749 = vmatprep.subr.bf16.mxu1 %v1152_v2 }
 0x615   :  { %v445_v35 = vpop.f32.mrb[4].mxu1 }
 0x616   :  { %v447_v36 = vpop.f32.mrb[5].mxu1  ;;  %v454_v43 = vrot.slane %v445_v35, 2 }
 0x617   :  { %v455_v37 = vrot.slane %v447_v36, 2  ;;  %v449_v38 = vpop.f32.mrb[6].mxu1  ;;  %v1361_v36 = vld [vmem:[#allocation3 + $0x10] sm:$0xff] }
 0x618   :  { %v450_v39 = vpop.f32.mrb[7].mxu1  ;;  %v458_v44 = vadd.f32 %v454_v43, %v1238_v27 }
 0x619   :  { %v459_v40 = vadd.f32 %v455_v37, %v1235_v20 }
 0x61b   :  { %v884_v42 = vmul.f32 -1.442695, %v459_v40 }
 0x61d   :  { %947 = vpow2.f32 %v884_v42 }
 0x61e   :  { %949 = vtanh.f32 %v458_v44 }
 0x627   :  { %v948_v45 = vpop.eup %947 }
 0x628   :  { %v464_v46 = vadd.f32 1.0, %v948_v45  ;;  %v950_v47 = vpop.eup %949 }
 0x629   :  { %v470_v2 = vsub.f32 %v950_v47, %v468_v49 }
 0x62a   :  { %951 = vrcp.f32 %v464_v46 }
 0x634   :  { %v952_v51 = vpop.eup %951 }
 0x635   :  { %v471_v53 = vmul.f32 %v952_v51, %v470_v2 }
 0x637   :  { %v473_v54 = vrot.slane %v471_v53, 6 }
 0x639   :  { %v475_v55 = vadd.f32 %v473_v54, %v1307_v33 }
 0x63b   :  { %v476_v20 = vsel %vm218_vm0, %v475_v55, 0.0  ;;  %v480_v56 = vmul.f32 %v475_v55, %v475_v55 }
 0x63c   :  { %477 = vadd.xlane.f32.xlu0 %v476_v20 }
 0x63d   :  { %v481_v57 = vsel %vm218_vm0, %v480_v56, 0.0 }
 0x63e   :  { %482 = vadd.xlane.f32.xlu1 %v481_v57 }
 0x6c9   :  { %v478_v27 = vpop.xlane.xlu0 %477 }
 0x6ca   :  { %v479_v58 = vmul.f32 0.03125, %v478_v27 }
 0x6cb   :  { %v483_v59 = vpop.xlane.xlu1 %482 }
 0x6cc   :  { %v485_v60 = vmul.f32 %v479_v58, %v479_v58  ;;  %v484_v61 = vmul.f32 0.03125, %v483_v59  ;;  %v487_v1 = vsub.f32 %v475_v55, %v479_v58 }
 0x6ce   :  { %v486_v62 = vsub.f32 %v484_v61, %v485_v60 }
 0x6d0   :  { %v488_v63 = vadd.f32 1e-05, %v486_v62 }
 0x6d2   :  { %953 = vrsqrt.f32 %v488_v63 }
 0x6dc   :  { %v954_v18 = vpop.eup %953 }
 0x6dd   :  { %v490_v19 = vmul.f32 %v954_v18, %v487_v1 }
 0x6df   :  { %v491_v21 = vmul.f32 %v1243_v48, %v490_v19 }
 0x6e1   :  { %v492_v24 = vadd.f32 %v1245_v50, %v491_v21 }
 0x6e3   :  { %v511_v25 = vpack.c.bf16 %v492_v24, %v492_v24  ;;  %v498_v26 = vrot.slane %v492_v24, 2 }
 0x6e5   :  { %545 = vmatmul.mubr.bf16.vlgmr.msra.gmra.mrb[8].mxu0 %v511_v25  ;;  %v504_v30 = vsel %vm503_vm2, %v502_v29, %v498_v26 }
 0x6e6   :  { %667 = vmatpush1.bf16.msra.mxu0 %v1154_v3  ;;  %698 = vmatprep.mubr.bf16.mxu0 %v1088_v0  ;;  %505 = vst [vmem:[#allocation9] sm:$0xff] %v504_v30 }
 0x6e7   :  { %668 = vmatprep.subr.bf16.mxu0 %v1157_v4 }
 0x6ea   :  { %669 = vmatpush1.bf16.msra.mxu0 %v1161_v5 }
 0x6eb   :  { %670 = vmatprep.subr.bf16.mxu0 %v1165_v6 }
 0x6ee   :  { %671 = vmatpush1.bf16.msra.mxu0 %v1169_v7 }
 0x6ef   :  { %672 = vmatprep.subr.bf16.mxu0 %v1173_v8 }
 0x6f2   :  { %673 = vmatpush1.bf16.msra.mxu0 %v1177_v9 }
 0x6f3   :  { %674 = vmatprep.subr.bf16.mxu0 %v1181_v10 }
 0x6f6   :  { %675 = vmatpush1.bf16.msra.mxu0 %v1185_v11 }
 0x6f7   :  { %676 = vmatprep.subr.bf16.mxu0 %v1189_v12 }
 0x6fa   :  { %677 = vmatpush1.bf16.msra.mxu0 %v1193_v13 }
 0x6fb   :  { %678 = vmatprep.subr.bf16.mxu0 %v1197_v14 }
 0x6fe   :  { %679 = vmatpush1.bf16.msra.mxu0 %v1201_v15 }
 0x6ff   :  { %680 = vmatprep.subr.bf16.mxu0 %v1205_v16 }
 0x702   :  { %681 = vmatpush1.bf16.msra.mxu0 %v1209_v17 }
 0x7b8   :  { %v546_v41 = vpop.f32.mrb[8].mxu0 }
 0x7b9   :  { %v548_v31 = vpop.f32.mrb[9].mxu0  ;;  %v553_v37 = vadd.f32 %v546_v41, %v1361_v36 }
 0x7ba   :  { %v554_v32 = vadd.f32 %v548_v31, %v1358_v52  ;;  %v550_v33 = vpop.f32.mrb[10].mxu0 }
 0x7bb   :  { %v551_v34 = vpop.f32.mrb[11].mxu0 }
 0x7bc   :  { %v885_v35 = vmul.f32 -1.442695, %v554_v32 }
 0x7be   :  { %955 = vpow2.f32 %v885_v35 }
 0x7bf   :  { %957 = vtanh.f32 %v553_v37 }
 0x7c8   :  { %v956_v38 = vpop.eup %955 }
 0x7c9   :  { %v559_v39 = vadd.f32 1.0, %v956_v38  ;;  %v958_v40 = vpop.eup %957 }
 0x7ca   :  { %v562_v42 = vsub.f32 %v958_v40, %v492_v24 }
 0x7cb   :  { %959 = vrcp.f32 %v559_v39 }
 0x7d5   :  { %v960_v43 = vpop.eup %959 }
 0x7d6   :  { %v563_v44 = vmul.f32 %v960_v43, %v562_v42 }
 0x7d8   :  { %v564_v45 = vadd.f32 %v563_v44, %v492_v24 }
 0x7da   :  { %v565_v46 = vsel %vm218_vm0, %v564_v45, 0.0  ;;  %v569_v47 = vmul.f32 %v564_v45, %v564_v45 }
 0x7db   :  { %566 = vadd.xlane.f32.xlu0 %v565_v46 }
 0x7dc   :  { %v570_v49 = vsel %vm218_vm0, %v569_v47, 0.0 }
 0x7dd   :  { %571 = vadd.xlane.f32.xlu1 %v570_v49 }
 0x868   :  { %v567_v2 = vpop.xlane.xlu0 %566 }
 0x869   :  { %v568_v51 = vmul.f32 0.03125, %v567_v2 }
 0x86a   :  { %v572_v53 = vpop.xlane.xlu1 %571 }
 0x86b   :  { %v574_v54 = vmul.f32 %v568_v51, %v568_v51  ;;  %v573_v55 = vmul.f32 0.03125, %v572_v53  ;;  %v576_v57 = vsub.f32 %v564_v45, %v568_v51 }
 0x86d   :  { %v575_v20 = vsub.f32 %v573_v55, %v574_v54 }
 0x86f   :  { %v577_v56 = vadd.f32 1e-05, %v575_v20 }
 0x871   :  { %961 = vrsqrt.f32 %v577_v56 }
 0x87b   :  { %v962_v27 = vpop.eup %961 }
 0x87c   :  { %v579_v58 = vmul.f32 %v962_v27, %v576_v57 }
 0x87e   :  { %v580_v59 = vmul.f32 %v1243_v48, %v579_v58 }
 0x880   :  { %v1368_v60 = vadd.f32 %v1245_v50, %v580_v59 }
 0x882   :  { %v582_v61 = vpack.c.bf16 %v1368_v60, %v1368_v60 }
 0x884   :  { %616 = vmatmul.mubr.bf16.vlgmr.msra.gmra.mrb[8].mxu1 %v582_v61 }
 0x885   :  { %750 = vmatpush1.bf16.msra.mxu1 %v1154_v3  ;;  %781 = vmatprep.mubr.bf16.mxu1 %v1088_v0 }
 0x886   :  { %751 = vmatprep.subr.bf16.mxu1 %v1157_v4 }
 0x889   :  { %752 = vmatpush1.bf16.msra.mxu1 %v1161_v5 }
 0x88a   :  { %753 = vmatprep.subr.bf16.mxu1 %v1165_v6 }
 0x88d   :  { %754 = vmatpush1.bf16.msra.mxu1 %v1169_v7 }
 0x88e   :  { %755 = vmatprep.subr.bf16.mxu1 %v1173_v8 }
 0x891   :  { %756 = vmatpush1.bf16.msra.mxu1 %v1177_v9 }
 0x892   :  { %757 = vmatprep.subr.bf16.mxu1 %v1181_v10 }
 0x895   :  { %758 = vmatpush1.bf16.msra.mxu1 %v1185_v11 }
 0x896   :  { %759 = vmatprep.subr.bf16.mxu1 %v1189_v12 }
 0x899   :  { %760 = vmatpush1.bf16.msra.mxu1 %v1193_v13 }
 0x89a   :  { %761 = vmatprep.subr.bf16.mxu1 %v1197_v14  ;;  %v640_v14 = vrot.slane %v1368_v60, 6 }
 0x89d   :  { %762 = vmatpush1.bf16.msra.mxu1 %v1201_v15 }
 0x89e   :  { %763 = vmatprep.subr.bf16.mxu1 %v1205_v16 }
 0x8a1   :  { %764 = vmatpush1.bf16.msra.mxu1 %v1209_v17 }
 0x957   :  { %v617_v0 = vpop.f32.mrb[8].mxu1 }
 0x958   :  { %v619_v3 = vpop.f32.mrb[9].mxu1  ;;  %v626_v9 = vrot.slane %v617_v0, 6 }
 0x959   :  { %v627_v4 = vrot.slane %v619_v3, 6  ;;  %v621_v5 = vpop.f32.mrb[10].mxu1 }
 0x95a   :  { %v622_v6 = vpop.f32.mrb[11].mxu1  ;;  %v630_v10 = vadd.f32 %v626_v9, %v1361_v36 }
 0x95b   :  { %v631_v7 = vadd.f32 %v627_v4, %v1358_v52 }
 0x95d   :  { %v886_v8 = vmul.f32 -1.442695, %v631_v7 }
 0x95f   :  { %963 = vpow2.f32 %v886_v8 }
 0x960   :  { %965 = vtanh.f32 %v630_v10 }
 0x969   :  { %v964_v11 = vpop.eup %963 }
 0x96a   :  { %v636_v12 = vadd.f32 1.0, %v964_v11  ;;  %v966_v13 = vpop.eup %965 }
 0x96b   :  { %v642_v15 = vsub.f32 %v966_v13, %v640_v14 }
 0x96c   :  { %967 = vrcp.f32 %v636_v12 }
 0x976   :  { %v968_v16 = vpop.eup %967 }
 0x977   :  { %v643_v17 = vmul.f32 %v968_v16, %v642_v15 }
 0x979   :  { %v645_v62 = vrot.slane %v643_v17, 2 }
 0x97b   :  { %v647_v63 = vadd.f32 %v645_v62, %v1368_v60 }
 0x97d   :  { %v648_v1 = vsel %vm218_vm0, %v647_v63, 0.0  ;;  %v652_v18 = vmul.f32 %v647_v63, %v647_v63 }
 0x97e   :  { %649 = vadd.xlane.f32.xlu0 %v648_v1 }
 0x97f   :  { %v653_v19 = vsel %vm218_vm0, %v652_v18, 0.0 }
 0x980   :  { %654 = vadd.xlane.f32.xlu1 %v653_v19 }
 0xa0b   :  { %v650_v21 = vpop.xlane.xlu0 %649 }
 0xa0c   :  { %v651_v22 = vmul.f32 0.03125, %v650_v21 }
 0xa0d   :  { %v655_v23 = vpop.xlane.xlu1 %654 }
 0xa0e   :  { %v657_v24 = vmul.f32 %v651_v22, %v651_v22  ;;  %v656_v25 = vmul.f32 0.03125, %v655_v23  ;;  %v659_v29 = vsub.f32 %v647_v63, %v651_v22 }
 0xa10   :  { %v658_v26 = vsub.f32 %v656_v25, %v657_v24 }
 0xa12   :  { %v660_v28 = vadd.f32 1e-05, %v658_v26 }
 0xa14   :  { %969 = vrsqrt.f32 %v660_v28 }
 0xa1e   :  { %v970_v30 = vpop.eup %969 }
 0xa1f   :  { %v662_v41 = vmul.f32 %v970_v30, %v659_v29 }
 0xa21   :  { %v663_v31 = vmul.f32 %v1243_v48, %v662_v41 }
 0xa23   :  { %v1396_v32 = vadd.f32 %v1245_v50, %v663_v31 }
 0xa25   :  { %v665_v33 = vpack.c.bf16 %v1396_v32, %v1396_v32  ;;  %v723_v49 = vrot.slane %v1396_v32, 4 }
 0xa27   :  { %699 = vmatmul.mubr.bf16.vlgmr.msra.gmra.mrb[12].mxu0 %v665_v33 }
 0xafa   :  { %v700_v34 = vpop.f32.mrb[12].mxu0 }
 0xafb   :  { %v702_v35 = vpop.f32.mrb[13].mxu0  ;;  %v709_v43 = vrot.slane %v700_v34, 4 }
 0xafc   :  { %v710_v37 = vrot.slane %v702_v35, 4  ;;  %v704_v38 = vpop.f32.mrb[14].mxu0 }
 0xafd   :  { %v705_v39 = vpop.f32.mrb[15].mxu0  ;;  %v713_v44 = vadd.f32 %v709_v43, %v1361_v36 }
 0xafe   :  { %v714_v40 = vadd.f32 %v710_v37, %v1358_v52 }
 0xb00   :  { %v887_v42 = vmul.f32 -1.442695, %v714_v40 }
 0xb02   :  { %971 = vpow2.f32 %v887_v42  ;;  %v831_v42 = vrot.slane %v1396_v32, 6 }
 0xb03   :  { %973 = vtanh.f32 %v713_v44 }
 0xb0c   :  { %v972_v45 = vpop.eup %971 }
 0xb0d   :  { %v719_v46 = vadd.f32 1.0, %v972_v45  ;;  %v974_v47 = vpop.eup %973 }
 0xb0e   :  { %v725_v2 = vsub.f32 %v974_v47, %v723_v49 }
 0xb0f   :  { %975 = vrcp.f32 %v719_v46  ;;  %v838_v46 = vsel %vm218_vm0, %v1368_v60, %v831_v42 }
 0xb19   :  { %v976_v51 = vpop.eup %975 }
 0xb1a   :  { %v726_v53 = vmul.f32 %v976_v51, %v725_v2 }
 0xb1c   :  { %v728_v54 = vrot.slane %v726_v53, 4 }
 0xb1e   :  { %v730_v55 = vadd.f32 %v728_v54, %v1396_v32 }
 0xb20   :  { %v731_v20 = vsel %vm218_vm0, %v730_v55, 0.0  ;;  %v735_v56 = vmul.f32 %v730_v55, %v730_v55 }
 0xb21   :  { %732 = vadd.xlane.f32.xlu0 %v731_v20 }
 0xb22   :  { %v736_v57 = vsel %vm218_vm0, %v735_v56, 0.0 }
 0xb23   :  { %737 = vadd.xlane.f32.xlu1 %v736_v57 }
 0xbae   :  { %v733_v27 = vpop.xlane.xlu0 %732 }
 0xbaf   :  { %v734_v58 = vmul.f32 0.03125, %v733_v27 }
 0xbb0   :  { %v738_v59 = vpop.xlane.xlu1 %737 }
 0xbb1   :  { %v740_v61 = vmul.f32 %v734_v58, %v734_v58  ;;  %v739_v0 = vmul.f32 0.03125, %v738_v59  ;;  %v742_v5 = vsub.f32 %v730_v55, %v734_v58 }
 0xbb3   :  { %v741_v3 = vsub.f32 %v739_v0, %v740_v61 }
 0xbb5   :  { %v743_v4 = vadd.f32 1e-05, %v741_v3 }
 0xbb7   :  { %977 = vrsqrt.f32 %v743_v4 }
 0xbc1   :  { %v978_v6 = vpop.eup %977 }
 0xbc2   :  { %v745_v7 = vmul.f32 %v978_v6, %v742_v5 }
 0xbc4   :  { %v746_v8 = vmul.f32 %v1243_v48, %v745_v7 }
 0xbc6   :  { %v747_v9 = vadd.f32 %v1245_v50, %v746_v8 }
 0xbc8   :  { %v748_v10 = vpack.c.bf16 %v747_v9, %v747_v9  ;;  %v806_v21 = vrot.slane %v747_v9, 2  ;;  %v833_v43 = vrot.slane %v747_v9, 4 }
 0xbca   :  { %782 = vmatmul.mubr.bf16.vlgmr.msra.gmra.mrb[12].mxu1 %v748_v10  ;;  %v839_v47 = vsel %vm501_vm1, %v838_v46, %v833_v43 }
 0xc9d   :  { %v783_v11 = vpop.f32.mrb[12].mxu1 }
 0xc9e   :  { %v785_v12 = vpop.f32.mrb[13].mxu1  ;;  %v792_v62 = vrot.slane %v783_v11, 2 }
 0xc9f   :  { %v793_v13 = vrot.slane %v785_v12, 2  ;;  %v787_v14 = vpop.f32.mrb[14].mxu1 }
 0xca0   :  { %v788_v15 = vpop.f32.mrb[15].mxu1  ;;  %v796_v63 = vadd.f32 %v792_v62, %v1361_v36 }
 0xca1   :  { %v797_v16 = vadd.f32 %v793_v13, %v1358_v52 }
 0xca3   :  { %v888_v17 = vmul.f32 -1.442695, %v797_v16 }
 0xca5   :  { %979 = vpow2.f32 %v888_v17 }
 0xca6   :  { %981 = vtanh.f32 %v796_v63 }
 0xcaf   :  { %v980_v1 = vpop.eup %979 }
 0xcb0   :  { %v802_v18 = vadd.f32 1.0, %v980_v1  ;;  %v982_v19 = vpop.eup %981 }
 0xcb1   :  { %v808_v22 = vsub.f32 %v982_v19, %v806_v21 }
 0xcb2   :  { %983 = vrcp.f32 %v802_v18 }
 0xcbc   :  { %v984_v23 = vpop.eup %983 }
 0xcbd   :  { %v809_v24 = vmul.f32 %v984_v23, %v808_v22 }
 0xcbf   :  { %v811_v25 = vrot.slane %v809_v24, 6 }
 0xcc1   :  { %v813_v26 = vadd.f32 %v811_v25, %v747_v9 }
 0xcc3   :  { %v814_v28 = vsel %vm218_vm0, %v813_v26, 0.0  ;;  %v818_v29 = vmul.f32 %v813_v26, %v813_v26 }
 0xcc4   :  { %815 = vadd.xlane.f32.xlu0 %v814_v28 }
 0xcc5   :  { %v819_v52 = vsel %vm218_vm0, %v818_v29, 0.0 }
 0xcc6   :  { %820 = vadd.xlane.f32.xlu1 %v819_v52 }
 0xd51   :  { %v816_v30 = vpop.xlane.xlu0 %815 }
 0xd52   :  { %v817_v36 = vmul.f32 0.03125, %v816_v30 }
 0xd53   :  { %v821_v41 = vpop.xlane.xlu1 %820 }
 0xd54   :  { %v823_v31 = vmul.f32 %v817_v36, %v817_v36  ;;  %v822_v33 = vmul.f32 0.03125, %v821_v41  ;;  %v825_v37 = vsub.f32 %v813_v26, %v817_v36 }
 0xd56   :  { %v824_v34 = vsub.f32 %v822_v33, %v823_v31 }
 0xd58   :  { %v826_v35 = vadd.f32 1e-05, %v824_v34 }
 0xd5a   :  { %985 = vrsqrt.f32 %v826_v35 }
 0xd64   :  { %v986_v38 = vpop.eup %985 }
 0xd65   :  { %v828_v39 = vmul.f32 %v986_v38, %v825_v37 }
 0xd67   :  { %v829_v40 = vmul.f32 %v1243_v48, %v828_v39 }
 0xd69   :  { %v830_v44 = vadd.f32 %v1245_v50, %v829_v40 }
 0xd6b   :  { %v836_v45 = vrot.slane %v830_v44, 2  ;;  %843 = vst [vmem:[#allocation2] sm:$0x3] %v830_v44 }
 0xd6d   :  { %v840_v49 = vsel %vm503_vm2, %v839_v47, %v836_v45 }
 0xd6e   :  { %842 = vst [vmem:[#allocation9 + $0x8] sm:$0xff] %v840_v49 }
 0xd6f   :  { %1064 = shalt.err (!%p1061_p0)
}
 0xd70   :  { %s1065_s29 = scalar_lea.hbm %s1437_s3, 256 }
 0xd71   :  { %p1066_p1 = scmp.ne.s32.totalorder %s1437_s3, %s1065_s29  ;;  %p1069_p2 = scmp.lt.u32.totalorder %s1065_s29, %s1437_s3 }
 0xd73   :  { %p1071_p3 = pnand %p1069_p2, %p1066_p1 }
 0xd75   :  { %1074 = shalt.err (!%p1071_p3)
}
 0xd76   :  { %855 = dma.vmem_to_hbm [thread:$0]  %s850_s25, 256, %s1437_s3, [#allocation5], %s1082_s22, %s1082_s22, %s1083_s23  }
 0xd77   :  { %1079 = dma.done.wait [#allocation5], 256  }
 0xd78   :  { %1080 = vsyncadd [#allocation5], 4294967040 }
 0xd79   :  { %859 = vsyncpa [#allocation4], 1 }
 0xd7a   :  { %860 = vsyncpa [#allocation7], 1 }
 0xd7b   :  { %861 = vsyncpa [#allocation5], 1 }

</bundles_post_ra>
